<compile_context>
chip_gen: v6e
topology: v6e:2x2x1
jax: 0.10.0
libtpu: 0.0.40
codegen_flags: <defaults>
</compile_context>

<pallas_src>
import numpy as np
import jax
import jax.numpy as jnp
from jax import lax
from jax.experimental import pallas as pl
from jax.experimental.pallas import tpu as pltpu


def _round_up(x, m):
    return ((x + m - 1) // m) * m


def _pair_center_kernel(rr_ref, cc_ref, lr_ref, lc_ref, pair_ref, csum_ref):
    """One (row_block, col_block) tile of the pairwise-distance reduction.

    rr_ref: (tm, FA)    row-block augmented features [x, |x|^2, 1, 0...]
    cc_ref: (tm, FA)    col-block augmented features [-2x, 1, |x|^2, 0...]
    lr_ref: (tm, C2P)   row-block padded one-hot labels
    lc_ref: (tm, C2P)   col-block padded one-hot labels
    pair_ref: (1, 1, C2P)  per-row-block pair-sum accumulator (resident output)
    csum_ref: (1, C2P, FA) per-row-block label-weighted feature sums (output)
    """
    i = pl.program_id(0)
    j = pl.program_id(1)

    rr = rr_ref[...]
    lr = lr_ref[...]

    @pl.when(j == 0)
    def _init():
        # Zero the resident pair-sum accumulator and emit the class-center
        # sums once per row block (independent of the column block).  The
        # contraction is on axis 0 directly -> no explicit transpose.
        pair_ref[...] = jnp.zeros_like(pair_ref)
        csum_ref[...] = lax.dot_general(
            lr, rr, (((0,), (0,)), ((), ())),
            preferred_element_type=jnp.float32)[None]

    # Symmetry: only compute the upper triangle of column blocks; mirrored
    # tiles contribute the same value to the global sums (weight 2 below).
    @pl.when(j >= i)
    def _compute():
        cc = cc_ref[...]
        lc = lc_ref[...]

        # d2[a,b] = |x_a|^2 + |x_b|^2 - 2 x_a.x_b via a single MXU matmul
        # (feature-axis contraction, no transpose materialized).
        d2 = lax.dot_general(rr, cc, (((1,), (1,)), ((), ())),
                             preferred_element_type=jnp.float32)   # (tm, tm)
        d = jnp.sqrt(jnp.maximum(d2, 0.0))                         # EUP sqrt

        # Label-weighted reduction on the MXU instead of an N x N mask:
        #   contrib[c] = sum_{a,b} d[a,b] * lr[a,c] * lc[b,c]
        # Class columns -> same-class pair sums; "valid" columns -> per-domain
        # total pair sums (valid columns also exclude zero padding).
        t = jnp.dot(d, lc, preferred_element_type=jnp.float32)     # (tm, C2P)
        contrib = jnp.sum(lr * t, axis=0)                          # (C2P,)
        scale = jnp.where(j > i, jnp.float32(2.0), jnp.float32(1.0))
        pair_ref[...] += (scale * contrib)[None, None, :]


def dist_loss(source_data, source_labels, target_data, target_labels, alpha,
              classes=4, tile=1024):
    """Pallas implementation of Dist_Loss.forward (returns a scalar)."""
    xs = source_data.astype(jnp.float32)
    xt = target_data.astype(jnp.float32)
    ns, f = xs.shape
    nt = xt.shape[0]
    c = int(classes)
    c2 = 2 * c + 2
    c2p = _round_up(c2, 128)          # lane-dense label width

    x = jnp.concatenate([xs, xt], axis=0)                            # (N, F)
    n = ns + nt

    # Augmented features folding the Gram broadcast adds into one matmul.
    sq = jnp.sum(x * x, axis=1, keepdims=True)                       # (N, 1)
    ones = jnp.ones((n, 1), jnp.float32)
    rowfeat = jnp.concatenate([x, sq, ones], axis=1)                 # (N, F+2)
    colfeat = jnp.concatenate([-2.0 * x, ones, sq], axis=1)          # (N, F+2)
    fa = _round_up(f + 2, 128)        # lane-dense feature width

    # One-hot labels + "valid row" columns (also mask row padding).
    ls_oh = jax.nn.one_hot(source_labels, c, dtype=jnp.float32)
    lt_oh = jax.nn.one_hot(target_labels, c, dtype=jnp.float32)
    lh_s = jnp.concatenate(
        [ls_oh, jnp.zeros((ns, c), jnp.float32),
         jnp.ones((ns, 1), jnp.float32), jnp.zeros((ns, 1), jnp.float32)],
        axis=1)
    lh_t = jnp.concatenate(
        [jnp.zeros((nt, c), jnp.float32), lt_oh,
         jnp.zeros((nt, 1), jnp.float32), jnp.ones((nt, 1), jnp.float32)],
        axis=1)
    lh = jnp.concatenate([lh_s, lh_t], axis=0)                       # (N, C2)

    # 256-aligned row tile (MXU / vreg friendly on v5e/v6e/v7x).
    tm = _round_up(min(int(tile), n), 256)
    n_pad = _round_up(n, tm)
    nb = n_pad // tm
    # NOTE: on v7x, nb >= 2 lets the "parallel" row axis shard across the
    # two TensorCores; for tiny N the single block is already negligible.

    rowfeat_p = jnp.pad(rowfeat, ((0, n_pad - n), (0, fa - (f + 2))))
    colfeat_p = jnp.pad(colfeat, ((0, n_pad - n), (0, fa - (f + 2))))
    lh_p = jnp.pad(lh, ((0, n_pad - n), (0, c2p - c2)))

    pair_out, csum_out = pl.pallas_call(
        _pair_center_kernel,
        out_shape=(
            jax.ShapeDtypeStruct((nb, 1, c2p), jnp.float32),
            jax.ShapeDtypeStruct((nb, c2p, fa), jnp.float32),
        ),
        grid=(nb, nb),
        in_specs=[
            pl.BlockSpec((tm, fa), lambda i, j: (i, 0)),    # row aug. features
            pl.BlockSpec((tm, fa), lambda i, j: (j, 0)),    # col aug. features
            pl.BlockSpec((tm, c2p), lambda i, j: (i, 0)),   # row labels
            pl.BlockSpec((tm, c2p), lambda i, j: (j, 0)),   # col labels
        ],
        out_specs=(
            pl.BlockSpec((1, 1, c2p), lambda i, j: (i, 0, 0)),
            pl.BlockSpec((1, c2p, fa), lambda i, j: (i, 0, 0)),
        ),
        compiler_params=pltpu.CompilerParams(
            dimension_semantics=("parallel", "arbitrary"),
            vmem_limit_bytes=48 * 1024 * 1024,
        ),
    )(rowfeat_p, colfeat_p, lh_p, lh_p)

    # ---- Tiny O(C*F) finalize in plain JAX ------------------------------
    pair = jnp.sum(pair_out, axis=(0, 1))                            # (C2P,)
    same_s = jnp.sum(pair[:c])
    same_t = jnp.sum(pair[c:2 * c])
    total_s = pair[2 * c]
    total_t = pair[2 * c + 1]
    diff_s = total_s - same_s
    diff_t = total_t - same_t
    alpha = jnp.float32(alpha)

    dist_1 = (0.5 * same_s - alpha * diff_s) / jnp.float32(ns)
    dist_2 = (0.5 * same_t - alpha * diff_t) / jnp.float32(nt)

    csum = jnp.sum(csum_out, axis=0)[:, :f]                          # (C2P, F)
    counts = jnp.sum(lh, axis=0)                                     # (C2,)
    cnt_s = counts[:c]
    cnt_t = counts[c:2 * c]
    # Guard against absent classes (torch.unique semantics): only classes
    # present in BOTH domains contribute to dist_31, with safe division.
    # TODO(synk): torch.unique's positional pairing differs if the two
    # domains contain different class sets; class-id pairing is used here.
    present = (cnt_s > 0) & (cnt_t > 0)
    cs = csum[:c] / jnp.where(cnt_s > 0, cnt_s, 1.0)[:, None]
    ct = csum[c:2 * c] / jnp.where(cnt_t > 0, cnt_t, 1.0)[:, None]
    dc = jnp.sqrt(jnp.maximum(jnp.sum((cs - ct) ** 2, axis=1), 0.0))
    n_present = jnp.maximum(jnp.sum(present.astype(jnp.float32)), 1.0)
    dist_31 = jnp.sum(jnp.where(present, dc, 0.0)) / n_present

    return dist_1 + dist_2 + dist_31


def _reference_dist_loss(xs, ls, xt, lt, alpha, classes=4):
    """Pure-numpy reference mirroring the PyTorch module."""
    def pdist(a, b):
        d2 = ((a[:, None, :] - b[None, :, :]) ** 2).sum(-1)
        return np.sqrt(np.maximum(d2, 0.0))

    def compactness(x, l):
        total = 0.0
        for cc in np.unique(l):
            cd = x[l == cc]
            total += pdist(cd, cd).sum() / 2.0
        return total / x.shape[0]

    def separability(x, l):
        u = np.unique(l)
        total = 0.0
        for i in range(len(u)):
            for j in range(len(u)):
                if i != j:
                    total += pdist(x[l == u[i]], x[l == u[j]]).sum()
        return total / x.shape[0]

    def centers(x, l):
        return np.stack([x[l == cc].mean(0) for cc in np.unique(l)])

    d1 = compactness(xs, ls) - alpha * separability(xs, ls)
    d2 = compactness(xt, lt) - alpha * separability(xt, lt)
    cs, ct = centers(xs, ls), centers(xt, lt)
    diag = np.sqrt(((cs - ct) ** 2).sum(-1))
    return d1 + d2 + diag.mean()


if __name__ == "__main__":
    key = jax.random.PRNGKey(0)
    k1, k2 = jax.random.split(key)

    N_S, N_T, FEAT, CLASSES = 16, 16, 32, 4
    source_data = jax.random.normal(k1, (N_S, FEAT), dtype=jnp.float32)
    target_data = jax.random.normal(k2, (N_T, FEAT), dtype=jnp.float32) + 0.5
    # Deterministic labels that contain every class in both sets.
    source_labels = jnp.arange(N_S, dtype=jnp.int32) % CLASSES
    target_labels = jnp.arange(N_T, dtype=jnp.int32) % CLASSES
    alpha = 0.1

    result = dist_loss(source_data, source_labels, target_data, target_labels,
                       alpha, classes=CLASSES)
    result = jax.block_until_ready(result)

    ref = _reference_dist_loss(np.asarray(source_data), np.asarray(source_labels),
                               np.asarray(target_data), np.asarray(target_labels),
                               alpha, classes=CLASSES)
    assert np.allclose(float(result), ref, rtol=1e-3, atol=1e-3), (float(result), ref)

    print("KERNEL_OK")
</pallas_src>

<mosaic_0001>
module attributes {stable_mosaic.version = 11 : i64} {
  func.func @_pair_center_kernel(%arg0: i32, %arg1: i32, %arg2: memref<256x128xf32, #tpu.memory_space<vmem>>, %arg3: memref<256x128xf32, #tpu.memory_space<vmem>>, %arg4: memref<256x128xf32, #tpu.memory_space<vmem>>, %arg5: memref<256x128xf32, #tpu.memory_space<vmem>>, %arg6: memref<1x1x128xf32, #tpu.memory_space<vmem>>, %arg7: memref<1x128x128xf32, #tpu.memory_space<vmem>>) attributes {dimension_semantics = [#tpu.dimension_semantics<parallel>, #tpu.dimension_semantics<arbitrary>], iteration_bounds = array<i64: 1, 1>, scalar_prefetch = 0 : i64, scratch_operands = 0 : i64, tpu.core_type = #tpu.core_type<tc>, window_params = [{transform_indices = @transform_0, window_bounds = array<i64: 256, 128>}, {transform_indices = @transform_1, window_bounds = array<i64: 256, 128>}, {transform_indices = @transform_2, window_bounds = array<i64: 256, 128>}, {transform_indices = @transform_3, window_bounds = array<i64: 256, 128>}, {transform_indices = @transform_4, window_bounds = array<i64: 1, 1, 128>}, {transform_indices = @transform_5, window_bounds = array<i64: 1, 128, 128>}]} {
    %c0 = arith.constant 0 : index
    %c0_0 = arith.constant 0 : index
    %0 = vector.load %arg2[%c0, %c0_0] : memref<256x128xf32, #tpu.memory_space<vmem>>, vector<256x128xf32>
    %c0_1 = arith.constant 0 : index
    %c0_2 = arith.constant 0 : index
    %1 = vector.load %arg4[%c0_1, %c0_2] : memref<256x128xf32, #tpu.memory_space<vmem>>, vector<256x128xf32>
    %c0_i32 = arith.constant 0 : i32
    %2 = arith.cmpi eq, %arg1, %c0_i32 : i32
    %3 = arith.extui %2 : i1 to i32
    %c0_i32_3 = arith.constant 0 : i32
    %4 = arith.cmpi ne, %3, %c0_i32_3 : i32
    scf.if %4 {
      %cst = arith.constant 0.000000e+00 : f32
      %8 = vector.broadcast %cst : f32 to vector<1x1x128xf32>
      %c0_5 = arith.constant 0 : index
      %c0_6 = arith.constant 0 : index
      %c0_7 = arith.constant 0 : index
      %9 = vector.load %arg6[%c0_5, %c0_6, %c0_7] : memref<1x1x128xf32, #tpu.memory_space<vmem>>, vector<1x1x128xf32>
      tpu.vector_store %arg6[%c0_5, %c0_6, %c0_7], %8 {strides = array<i32>} : memref<1x1x128xf32, #tpu.memory_space<vmem>>, vector<1x1x128xf32>,
      %cst_8 = arith.constant dense<0.000000e+00> : vector<128x128xf32>
      %10 = tpu.matmul %1, %0, %cst_8 {dimension_numbers = #tpu.dot_dimension_numbers<[0], [0], [1], [1], [0, 1, 1, 1], [], []>} : vector<256x128xf32>, vector<256x128xf32>, vector<128x128xf32> -> vector<128x128xf32>
      %11 = vector.shape_cast %10 : vector<128x128xf32> to vector<1x128x128xf32>
      %c0_9 = arith.constant 0 : index
      %c0_10 = arith.constant 0 : index
      %c0_11 = arith.constant 0 : index
      %12 = vector.load %arg7[%c0_9, %c0_10, %c0_11] : memref<1x128x128xf32, #tpu.memory_space<vmem>>, vector<1x128x128xf32>
      tpu.vector_store %arg7[%c0_9, %c0_10, %c0_11], %11 {strides = array<i32>} : memref<1x128x128xf32, #tpu.memory_space<vmem>>, vector<1x128x128xf32>,
    } else {
    }
    %5 = arith.cmpi sge, %arg1, %arg0 : i32
    %6 = arith.extui %5 : i1 to i32
    %c0_i32_4 = arith.constant 0 : i32
    %7 = arith.cmpi ne, %6, %c0_i32_4 : i32
    scf.if %7 {
      %c0_5 = arith.constant 0 : index
      %c0_6 = arith.constant 0 : index
      %8 = vector.load %arg3[%c0_5, %c0_6] : memref<256x128xf32, #tpu.memory_space<vmem>>, vector<256x128xf32>
      %c0_7 = arith.constant 0 : index
      %c0_8 = arith.constant 0 : index
      %9 = vector.load %arg5[%c0_7, %c0_8] : memref<256x128xf32, #tpu.memory_space<vmem>>, vector<256x128xf32>
      %cst = arith.constant dense<0.000000e+00> : vector<256x256xf32>
      %10 = tpu.matmul %0, %8, %cst {dimension_numbers = #tpu.dot_dimension_numbers<[1], [1], [0], [0], [0, 0, 1, 0], [], []>} : vector<256x128xf32>, vector<256x128xf32>, vector<256x256xf32> -> vector<256x256xf32>
      %cst_9 = arith.constant 0.000000e+00 : f32
      %11 = vector.broadcast %cst_9 : f32 to vector<256x256xf32>
      %12 = arith.maximumf %10, %11 : vector<256x256xf32>
      %13 = math.sqrt %12 : vector<256x256xf32>
      %cst_10 = arith.constant dense<0.000000e+00> : vector<256x128xf32>
      %14 = tpu.matmul %13, %9, %cst_10 {dimension_numbers = #tpu.dot_dimension_numbers<[1], [0], [0], [1], [0, 0, 1, 1], [], []>} : vector<256x256xf32>, vector<256x128xf32>, vector<256x128xf32> -> vector<256x128xf32>
      %15 = arith.mulf %1, %14 : vector<256x128xf32>
      %cst_11 = arith.constant dense<0.000000e+00> : vector<128xf32>
      %16 = vector.multi_reduction <add>, %15, %cst_11 [0] : vector<256x128xf32> to vector<128xf32>
      %17 = arith.cmpi sgt, %arg1, %arg0 : i32
      %cst_12 = arith.constant 2.000000e+00 : f32
      %cst_13 = arith.constant 1.000000e+00 : f32
      %18 = arith.select %17, %cst_12, %cst_13 : f32
      %c0_14 = arith.constant 0 : index
      %c0_15 = arith.constant 0 : index
      %c0_16 = arith.constant 0 : index
      %19 = vector.load %arg6[%c0_14, %c0_15, %c0_16] : memref<1x1x128xf32, #tpu.memory_space<vmem>>, vector<1x1x128xf32>
      %20 = vector.broadcast %18 : f32 to vector<128xf32>
      %21 = arith.mulf %20, %16 : vector<128xf32>
      %22 = vector.shape_cast %21 : vector<128xf32> to vector<1x1x128xf32>
      %23 = arith.addf %19, %22 : vector<1x1x128xf32>
      %c0_17 = arith.constant 0 : index
      %c0_18 = arith.constant 0 : index
      %c0_19 = arith.constant 0 : index
      %24 = vector.load %arg6[%c0_17, %c0_18, %c0_19] : memref<1x1x128xf32, #tpu.memory_space<vmem>>, vector<1x1x128xf32>
      tpu.vector_store %arg6[%c0_17, %c0_18, %c0_19], %23 {strides = array<i32>} : memref<1x1x128xf32, #tpu.memory_space<vmem>>, vector<1x1x128xf32>,
    } else {
    }
    return
  }
  func.func @transform_0(%arg0: i32, %arg1: i32) -> (i32, i32) {
    %c0_i32 = arith.constant 0 : i32
    %c0_i32_0 = arith.constant 0 : i32
    return %arg0, %c0_i32 : i32, i32
  }
  func.func @transform_1(%arg0: i32, %arg1: i32) -> (i32, i32) {
    %c0_i32 = arith.constant 0 : i32
    %c0_i32_0 = arith.constant 0 : i32
    return %arg1, %c0_i32 : i32, i32
  }
  func.func @transform_2(%arg0: i32, %arg1: i32) -> (i32, i32) {
    %c0_i32 = arith.constant 0 : i32
    %c0_i32_0 = arith.constant 0 : i32
    return %arg0, %c0_i32 : i32, i32
  }
  func.func @transform_3(%arg0: i32, %arg1: i32) -> (i32, i32) {
    %c0_i32 = arith.constant 0 : i32
    %c0_i32_0 = arith.constant 0 : i32
    return %arg1, %c0_i32 : i32, i32
  }
  func.func @transform_4(%arg0: i32, %arg1: i32) -> (i32, i32, i32) {
    %c0_i32 = arith.constant 0 : i32
    %c0_i32_0 = arith.constant 0 : i32
    %c0_i32_1 = arith.constant 0 : i32
    return %arg0, %c0_i32, %c0_i32_0 : i32, i32, i32
  }
  func.func @transform_5(%arg0: i32, %arg1: i32) -> (i32, i32, i32) {
    %c0_i32 = arith.constant 0 : i32
    %c0_i32_0 = arith.constant 0 : i32
    %c0_i32_1 = arith.constant 0 : i32
    return %arg0, %c0_i32, %c0_i32_0 : i32, i32, i32
  }
}

</mosaic_0001>

<bundles_post_ra>
// kernel: tpu_custom_call.1
= control target key start
LH: loop header
LB: loop body
LE: loop exit
PB: predicated region body
PF: predicated region fallthrough
CT: control target
= control target key end

     0   :  { %11 = vsyncpa [#allocation3], 0  ;;  %s3366_s0 = inlined_call_operand.hbm [shape: f32[256,128], index: 0, kind: input, shape index: {}]   ;;  %s3367_s1 = inlined_call_operand.hbm [shape: f32[256,128], index: 1, kind: input, shape index: {}]   ;;  %s3368_s2 = inlined_call_operand.hbm [shape: f32[256,128], index: 2, kind: input, shape index: {}]   ;;  %s3369_s3 = inlined_call_operand.hbm [shape: f32[256,128], index: 3, kind: input, shape index: {}]   ;;  %s3370_s4 = inlined_call_operand.hbm [shape: f32[1,1,128], index: 4, kind: output, shape index: {0}]   ;;  %s3371_s5 = inlined_call_operand.hbm [shape: f32[1,128,128], index: 5, kind: output, shape index: {1}]  }
   0x1   :  { %12 = vsyncpa [#allocation6], 0 }
   0x2   :  { %13 = vsyncpa [#allocation9], 0 }
   0x3   :  { %14 = vsyncpa [#allocation4], 0 }
   0x4   :  { %15 = vsyncpa [#allocation12], 0  ;;  %s2192_s18 = smov [#allocation5]   ;;  %s2193_s20 = smov [#allocation2]  }
   0x5   :  { %s33_s19 = sshll.u32 %s2192_s18, 4  ;;  %s21_s21 = sshll.u32 %s2193_s20, 4  ;;  %s34_s19 = int_to_ptr.vmem [resolvable:$true] %s33_s19  ;;  %s22_s21 = int_to_ptr.vmem [resolvable:$true] %s21_s21 }
   0x6   :  { %s2070_s22 = scalar_lea.vmem %s34_s19, 4096  ;;  %p2075_p1 = scmp.lt.s32.totalorder %s34_s19, %s34_s19 }
   0x7   :  { %p2071_p0 = scmp.ne.s32.totalorder %s34_s19, %s2070_s22  ;;  %p2076_p2 = scmp.lt.s32.totalorder %s2070_s22, %s2070_s22 }
   0x9   :  { %p2077_p3 = por %p2076_p2, %p2075_p1 }
   0xb   :  { %p2078_p4 = pnand %p2077_p3, %p2071_p0 }
   0xd   :  { %2081 = shalt.err (!%p2078_p4)
}
   0xe   :  { %s2194_s23 = smov 128   ;;  %s2195_s24 = smov 8  }
   0xf   :  { %39 = dma.hbm_to_vmem [thread:$0]  %s3367_s1, 4096, %s34_s19, [#allocation6], %s2194_s23, %s2194_s23, %s2195_s24  }
  0x10   :  { %s2090_s27 = scalar_lea.vmem %s22_s21, 4096  ;;  %p2095_p6 = scmp.lt.s32.totalorder %s22_s21, %s22_s21 }
  0x11   :  { %p2091_p5 = scmp.ne.s32.totalorder %s22_s21, %s2090_s27  ;;  %p2096_p7 = scmp.lt.s32.totalorder %s2090_s27, %s2090_s27 }
  0x13   :  { %p2097_p8 = por %p2096_p7, %p2095_p6 }
  0x15   :  { %p2098_p9 = pnand %p2097_p8, %p2091_p5 }
  0x17   :  { %2101 = shalt.err (!%p2098_p9)
}
  0x18   :  { %27 = dma.hbm_to_vmem [thread:$0]  %s3366_s0, 4096, %s22_s21, [#allocation3], %s2194_s23, %s2194_s23, %s2195_s24  }
  0x19   :  { %s2196_s30 = smov [#allocation7]   ;;  %s2197_s7 = smov [#allocation8]  }
  0x1a   :  { %s45_s6 = sshll.u32 %s2196_s30, 4  ;;  %s57_s8 = sshll.u32 %s2197_s7, 4  ;;  %s46_s6 = int_to_ptr.vmem [resolvable:$true] %s45_s6  ;;  %s58_s8 = int_to_ptr.vmem [resolvable:$true] %s57_s8 }
  0x1b   :  { %s2110_s1 = scalar_lea.vmem %s46_s6, 4096  ;;  %p2115_p11 = scmp.lt.s32.totalorder %s46_s6, %s46_s6 }
  0x1c   :  { %p2111_p10 = scmp.ne.s32.totalorder %s46_s6, %s2110_s1  ;;  %p2116_p12 = scmp.lt.s32.totalorder %s2110_s1, %s2110_s1 }
  0x1e   :  { %p2117_p13 = por %p2116_p12, %p2115_p11 }
  0x20   :  { %p2118_p0 = pnand %p2117_p13, %p2111_p10 }
  0x22   :  { %2121 = shalt.err (!%p2118_p0)
}
  0x23   :  { %51 = dma.hbm_to_vmem [thread:$0]  %s3368_s2, 4096, %s46_s6, [#allocation6], %s2194_s23, %s2194_s23, %s2195_s24  }
  0x24   :  { %s2130_s0 = scalar_lea.vmem %s58_s8, 4096  ;;  %p2135_p2 = scmp.lt.s32.totalorder %s58_s8, %s58_s8 }
  0x25   :  { %p2131_p1 = scmp.ne.s32.totalorder %s58_s8, %s2130_s0  ;;  %p2136_p3 = scmp.lt.s32.totalorder %s2130_s0, %s2130_s0 }
  0x27   :  { %p2137_p4 = por %p2136_p3, %p2135_p2 }
  0x29   :  { %p2138_p5 = pnand %p2137_p4, %p2131_p1 }
  0x2b   :  { %2141 = shalt.err (!%p2138_p5)
}
  0x2c   :  { %63 = dma.hbm_to_vmem [thread:$0]  %s3369_s3, 4096, %s58_s8, [#allocation9], %s2194_s23, %s2194_s23, %s2195_s24  }
  0x2d   :  { %2182 = dma.done.wait [#allocation3], 4096  }
  0x2e   :  { %2183 = vsyncadd [#allocation3], 4294963200 }
  0x2f   :  { %2184 = dma.done.wait [#allocation6], 8192  }
  0x30   :  { %2185 = vsyncadd [#allocation6], 4294959104 }
  0x31   :  { %2186 = dma.done.wait [#allocation9], 4096  }
  0x32   :  { %2187 = vsyncadd [#allocation9], 4294963200  ;;  %v405_v0 = vld [vmem:[#allocation5 + $0xf8] sm:$0xff]  ;;  %v404_v2 = vld [vmem:[#allocation5 + $0xf0] sm:$0xff]  ;;  %s2199_s2 = smov [#allocation11]  }
  0x33   :  { %v389_v1 = vld [vmem:[#allocation5 + $0x78] sm:$0xff]  ;;  %1621 = vmatprep.subr.mxu1 %v405_v0  ;;  %v388_v3 = vld [vmem:[#allocation5 + $0x70] sm:$0xff]  ;;  %v403_v4 = vld [vmem:[#allocation5 + $0xe8] sm:$0xff]  ;;  %s1523_s3 = sshll.u32 %s2199_s2, 4  ;;  %s1524_s3 = int_to_ptr.vmem [resolvable:$true] %s1523_s3 }
  0x34   :  { %1622 = vmatpush3.xpose.msra.mxu1 %v389_v1  ;;  %v387_v5 = vld [vmem:[#allocation5 + $0x68] sm:$0xff]  ;;  %v402_v6 = vld [vmem:[#allocation5 + $0xe0] sm:$0xff]  ;;  %v401_v9 = vld [vmem:[#allocation5 + $0xd8] sm:$0xff]  ;;  %s2142_s13 = scalar_lea.vmem %s1524_s3, 2048  ;;  %p2147_p7 = scmp.lt.s32.totalorder %s1524_s3, %s1524_s3 }
  0x35   :  { %1623 = vmatprep.subr.mxu1 %v404_v2  ;;  %v2255_v7 = vld [vmem:[#allocation2] sm:$0xff]  ;;  %v109_v13 = vld [vmem:[#allocation7 + $0x8] sm:$0xff]  ;;  %v385_v15 = vld [vmem:[#allocation5 + $0x58] sm:$0xff]  ;;  %p2143_p6 = scmp.ne.s32.totalorder %s1524_s3, %s2142_s13  ;;  %p2148_p8 = scmp.lt.s32.totalorder %s2142_s13, %s2142_s13 }
  0x36   :  { %v386_v8 = vld [vmem:[#allocation5 + $0x60] sm:$0xff]  ;;  %1653 = vmatprep.mubr.f32.mxu1 %v2255_v7  ;;  %v125_v14 = vld [vmem:[#allocation7 + $0x88] sm:$0xff]  ;;  %v400_v16 = vld [vmem:[#allocation5 + $0xd0] sm:$0xff] }
  0x37   :  { %v108_v10 = vld [vmem:[#allocation7] sm:$0xff]  ;;  %v1792_v17 = vpack.i.bf16 %v109_v13, %v125_v14  ;;  %v110_v18 = vld [vmem:[#allocation7 + $0x10] sm:$0xff]  ;;  %v399_v21 = vld [vmem:[#allocation5 + $0xc8] sm:$0xff]  ;;  %p2149_p9 = por %p2148_p8, %p2147_p7 }
  0x38   :  { %1624 = vmatpush3.xpose.msra.mxu1 %v388_v3  ;;  %v124_v11 = vld [vmem:[#allocation7 + $0x80] sm:$0xff]  ;;  %v126_v19 = vld [vmem:[#allocation7 + $0x90] sm:$0xff]  ;;  %v111_v23 = vld [vmem:[#allocation7 + $0x18] sm:$0xff] }
  0x39   :  { %1625 = vmatprep.subr.mxu1 %v403_v4  ;;  %v1790_v12 = vpack.i.bf16 %v108_v10, %v124_v11  ;;  %v384_v20 = vld [vmem:[#allocation5 + $0x50] sm:$0xff]  ;;  %v1794_v22 = vpack.i.bf16 %v110_v18, %v126_v19  ;;  %v127_v24 = vld [vmem:[#allocation7 + $0x98] sm:$0xff]  ;;  %v383_v25 = vld [vmem:[#allocation5 + $0x48] sm:$0xff]  ;;  %p2150_p10 = pnand %p2149_p9, %p2143_p6 }
  0x3a   :  { %v398_v26 = vld [vmem:[#allocation5 + $0xc0] sm:$0xff]  ;;  %v1796_v27 = vpack.i.bf16 %v111_v23, %v127_v24  ;;  %v397_v31 = vld [vmem:[#allocation5 + $0xb8] sm:$0xff]  ;;  %v113_v33 = vld [vmem:[#allocation7 + $0x28] sm:$0xff] }
  0x3b   :  { %1791 = vxpose.xlu0.b32.start [1/16] %v1790_v12, 128  ;;  %v112_v28 = vld [vmem:[#allocation7 + $0x20] sm:$0xff]  ;;  %v129_v34 = vld [vmem:[#allocation7 + $0xa8] sm:$0xff]  ;;  %v381_v35 = vld [vmem:[#allocation5 + $0x38] sm:$0xff] }
  0x3c   :  { %1626 = vmatpush3.xpose.msra.mxu1 %v387_v5  ;;  %v128_v29 = vld [vmem:[#allocation7 + $0xa0] sm:$0xff]  ;;  %v396_v36 = vld [vmem:[#allocation5 + $0xb0] sm:$0xff]  ;;  %v1800_v37 = vpack.i.bf16 %v113_v33, %v129_v34  ;;  %v395_v41 = vld [vmem:[#allocation5 + $0xa8] sm:$0xff] }
  0x3d   :  { %1627 = vmatprep.subr.mxu1 %v402_v6  ;;  %v382_v30 = vld [vmem:[#allocation5 + $0x40] sm:$0xff]  ;;  %v1798_v32 = vpack.i.bf16 %v112_v28, %v128_v29  ;;  %v114_v38 = vld [vmem:[#allocation7 + $0x30] sm:$0xff]  ;;  %v115_v43 = vld [vmem:[#allocation7 + $0x38] sm:$0xff] }
  0x3e   :  { %v130_v39 = vld [vmem:[#allocation7 + $0xb0] sm:$0xff]  ;;  %v131_v44 = vld [vmem:[#allocation7 + $0xb8] sm:$0xff]  ;;  %v379_v45 = vld [vmem:[#allocation5 + $0x28] sm:$0xff] }
  0x3f   :  { %1793 = vxpose.xlu0.b32.cont [2/16] %v1792_v17, 128  ;;  %v380_v40 = vld [vmem:[#allocation5 + $0x30] sm:$0xff]  ;;  %v1802_v42 = vpack.i.bf16 %v114_v38, %v130_v39  ;;  %v394_v46 = vld [vmem:[#allocation5 + $0xa0] sm:$0xff]  ;;  %v1804_v47 = vpack.i.bf16 %v115_v43, %v131_v44  ;;  %v393_v51 = vld [vmem:[#allocation5 + $0x98] sm:$0xff] }
  0x40   :  { %1628 = vmatpush3.xpose.msra.mxu1 %v386_v8  ;;  %v116_v48 = vld [vmem:[#allocation7 + $0x40] sm:$0xff]  ;;  %v117_v53 = vld [vmem:[#allocation7 + $0x48] sm:$0xff]  ;;  %v377_v55 = vld [vmem:[#allocation5 + $0x18] sm:$0xff] }
  0x41   :  { %1629 = vmatprep.subr.mxu1 %v401_v9  ;;  %v132_v49 = vld [vmem:[#allocation7 + $0xc0] sm:$0xff]  ;;  %v133_v54 = vld [vmem:[#allocation7 + $0xc8] sm:$0xff]  ;;  %v392_v56 = vld [vmem:[#allocation5 + $0x90] sm:$0xff] }
  0x42   :  { %v378_v50 = vld [vmem:[#allocation5 + $0x20] sm:$0xff]  ;;  %v1806_v52 = vpack.i.bf16 %v116_v48, %v132_v49  ;;  %v1808_v57 = vpack.i.bf16 %v117_v53, %v133_v54  ;;  %v118_v58 = vld [vmem:[#allocation7 + $0x50] sm:$0xff]  ;;  %v391_v61 = vld [vmem:[#allocation5 + $0x88] sm:$0xff] }
  0x43   :  { %1795 = vxpose.xlu0.b32.cont [3/16] %v1794_v22, 128  ;;  %v134_v59 = vld [vmem:[#allocation7 + $0xd0] sm:$0xff]  ;;  %v119_v63 = vld [vmem:[#allocation7 + $0x58] sm:$0xff]  ;;  %v375_v2 = vld [vmem:[#allocation5 + $0x8] sm:$0xff] }
  0x44   :  { %1630 = vmatpush3.xpose.msra.mxu1 %v385_v15  ;;  %v376_v60 = vld [vmem:[#allocation5 + $0x10] sm:$0xff]  ;;  %v1810_v62 = vpack.i.bf16 %v118_v58, %v134_v59  ;;  %v135_v0 = vld [vmem:[#allocation7 + $0xd8] sm:$0xff]  ;;  %v390_v4 = vld [vmem:[#allocation5 + $0x80] sm:$0xff] }
  0x45   :  { %1631 = vmatprep.subr.mxu1 %v400_v16  ;;  %v2258_v1 = vld [vmem:[#allocation2 + $0xf8] sm:$0xff]  ;;  %v1812_v5 = vpack.i.bf16 %v119_v63, %v135_v0  ;;  %v2263_v6 = vld [vmem:[#allocation2 + $0xf0] sm:$0xff]  ;;  %v120_v9 = vld [vmem:[#allocation7 + $0x60] sm:$0xff] }
  0x46   :  { %v2260_v3 = vld [vmem:[#allocation2 + $0x78] sm:$0xff]  ;;  %1541 = vmatprep.subr.mxu0 %v2258_v1  ;;  %v2266_v8 = vld [vmem:[#allocation2 + $0x70] sm:$0xff]  ;;  %v136_v10 = vld [vmem:[#allocation7 + $0xe0] sm:$0xff] }
  0x47   :  { %1797 = vxpose.xlu0.b32.cont [4/16] %v1796_v27, 128  ;;  %1542 = vmatpush3.msra.mxu0 %v2260_v3  ;;  %v2269_v11 = vld [vmem:[#allocation2 + $0xe8] sm:$0xff]  ;;  %v374_v12 = vld [vmem:[#allocation5] sm:$0xff]  ;;  %v1814_v14 = vpack.i.bf16 %v120_v9, %v136_v10  ;;  %v2281_v19 = vld [vmem:[#allocation2 + $0xd8] sm:$0xff] }
  0x48   :  { %1632 = vmatpush3.xpose.msra.mxu1 %v384_v20  ;;  %1543 = vmatprep.subr.mxu0 %v2263_v6  ;;  %v2272_v13 = vld [vmem:[#allocation2 + $0x68] sm:$0xff]  ;;  %v2275_v15 = vld [vmem:[#allocation2 + $0xe0] sm:$0xff]  ;;  %v2198_v20 = vmov 0.0   ;;  %v2287_v22 = vld [vmem:[#allocation2 + $0x58] sm:$0xff] }
  0x49   :  { %1633 = vmatprep.subr.mxu1 %v399_v21  ;;  %1544 = vmatpush3.msra.mxu0 %v2266_v8  ;;  %v2278_v16 = vld [vmem:[#allocation2 + $0x60] sm:$0xff]  ;;  %v121_v17 = vld [vmem:[#allocation7 + $0x68] sm:$0xff]  ;;  %144 = vst [vmem:[#allocation10] sm:$0x1] %v2198_v20  ;;  %v2291_v24 = vld [vmem:[#allocation2 + $0xd0] sm:$0xff] }
  0x4a   :  { %1545 = vmatprep.subr.mxu0 %v2269_v11  ;;  %v137_v18 = vld [vmem:[#allocation7 + $0xe8] sm:$0xff]  ;;  %v138_v27 = vld [vmem:[#allocation7 + $0xf0] sm:$0xff]  ;;  %v2302_v29 = vld [vmem:[#allocation8 + $0x78] sm:$0xff] }
  0x4b   :  { %1799 = vxpose.xlu0.b32.cont [5/16] %v1798_v32, 128  ;;  %1546 = vmatpush3.msra.mxu0 %v2272_v13  ;;  %v2285_v21 = vld [vmem:[#allocation2 + $0x8] sm:$0xff]  ;;  %v1816_v23 = vpack.i.bf16 %v121_v17, %v137_v18  ;;  %v2308_v33 = vld [vmem:[#allocation2 + $0xc0] sm:$0xff]  ;;  %v79_v38 = vld [vmem:[#allocation2 + $0x18] sm:$0xff] }
  0x4c   :  { %1634 = vmatpush3.xpose.msra.mxu1 %v383_v25  ;;  %1547 = vmatprep.subr.mxu0 %v2275_v15  ;;  %v2295_v25 = vld [vmem:[#allocation2 + $0x50] sm:$0xff]  ;;  %v2299_v28 = vld [vmem:[#allocation2 + $0xc8] sm:$0xff]  ;;  %v2312_v34 = vld [vmem:[#allocation2 + $0x40] sm:$0xff] }
  0x4d   :  { %1635 = vmatprep.subr.mxu1 %v398_v26  ;;  %1548 = vmatpush3.msra.mxu0 %v2278_v16  ;;  %v122_v26 = vld [vmem:[#allocation7 + $0x70] sm:$0xff]  ;;  %v83_v39 = vld [vmem:[#allocation2 + $0x38] sm:$0xff]  ;;  %v2323_v43 = vld [vmem:[#allocation2 + $0xa8] sm:$0xff] }
  0x4e   :  { %1549 = vmatprep.subr.mxu0 %v2281_v19  ;;  %v1818_v32 = vpack.i.bf16 %v122_v26, %v138_v27  ;;  %v2325_v44 = vld [vmem:[#allocation8 + $0x70] sm:$0xff]  ;;  %v2332_v48 = vld [vmem:[#allocation2 + $0x98] sm:$0xff]  ;;  %v2335_v49 = vld [vmem:[#allocation8 + $0x68] sm:$0xff] }
  0x4f   :  { %1801 = vxpose.xlu0.b32.cont [6/16] %v1800_v37, 128  ;;  %1550 = vmatpush3.msra.mxu0 %v2287_v22  ;;  %v2315_v37 = vld [vmem:[#allocation2 + $0xb8] sm:$0xff]  ;;  %v2348_v53 = vld [vmem:[#allocation2 + $0x80] sm:$0xff]  ;;  %v2377_v58 = vld [vmem:[#allocation8 + $0x30] sm:$0xff] }
  0x50   :  { %1636 = vmatpush3.xpose.msra.mxu1 %v382_v30  ;;  %1551 = vmatprep.subr.mxu0 %v2291_v24  ;;  %v78_v30 = vld [vmem:[#allocation2 + $0x10] sm:$0xff]  ;;  %v2355_v54 = vld [vmem:[#allocation8 + $0x58] sm:$0xff]  ;;  %v2382_v59 = vld [vmem:[#allocation8 + $0x28] sm:$0xff] }
  0x51   :  { %1637 = vmatprep.subr.mxu1 %v397_v31  ;;  %1552 = vmatpush3.msra.mxu0 %v2295_v25  ;;  %v2304_v31 = vld [vmem:[#allocation2 + $0x48] sm:$0xff]  ;;  %v2407_v0 = vld [vmem:[#allocation8] sm:$0xff]  ;;  %v2438_v10 = vld [vmem:[#allocation8 + $0xd8] sm:$0xff] }
  0x52   :  { %1553 = vmatprep.subr.mxu0 %v2299_v28  ;;  %v2402_v63 = vld [vmem:[#allocation8 + $0x8] sm:$0xff]  ;;  %v2427_v9 = vld [vmem:[#allocation8 + $0xe0] sm:$0xff] }
  0x53   :  { %1803 = vxpose.xlu0.b32.cont [7/16] %v1802_v42, 128  ;;  %1554 = vmatpush3.msra.mxu0 %v2304_v31  ;;  %v82_v42 = vld [vmem:[#allocation2 + $0x30] sm:$0xff] }
  0x54   :  { %1638 = vmatpush3.xpose.msra.mxu1 %v381_v35  ;;  %v123_v35 = vld [vmem:[#allocation7 + $0x78] sm:$0xff]  ;;  %1555 = vmatprep.subr.mxu0 %v2308_v33 }
  0x55   :  { %1639 = vmatprep.subr.mxu1 %v396_v36  ;;  %v139_v36 = vld [vmem:[#allocation7 + $0xf8] sm:$0xff]  ;;  %1556 = vmatpush3.msra.mxu0 %v2312_v34 }
  0x56   :  { %1557 = vmatprep.subr.mxu0 %v2315_v37 }
  0x57   :  { %1805 = vxpose.xlu0.b32.cont [8/16] %v1804_v47, 128  ;;  %1558 = vmatpush3.msra.mxu0 %v83_v39  ;;  %v2329_v47 = vld [vmem:[#allocation2 + $0xa0] sm:$0xff] }
  0x58   :  { %1640 = vmatpush3.xpose.msra.mxu1 %v380_v40  ;;  %v1820_v40 = vpack.i.bf16 %v123_v35, %v139_v36 }
  0x59   :  { %1641 = vmatprep.subr.mxu1 %v395_v41  ;;  %v2320_v41 = vld [vmem:[#allocation2 + $0xb0] sm:$0xff] }
  0x5a   :  { %1559 = vmatprep.subr.mxu0 %v2320_v41 }
  0x5b   :  { %1807 = vxpose.xlu0.b32.cont [9/16] %v1806_v52, 128  ;;  %1560 = vmatpush3.msra.mxu0 %v82_v42  ;;  %v2345_v52 = vld [vmem:[#allocation8 + $0x60] sm:$0xff] }
  0x5c   :  { %1642 = vmatpush3.xpose.msra.mxu1 %v379_v45  ;;  %v80_v45 = vld [vmem:[#allocation2 + $0x20] sm:$0xff]  ;;  %1561 = vmatprep.subr.mxu0 %v2323_v43 }
  0x5d   :  { %1643 = vmatprep.subr.mxu1 %v394_v46  ;;  %v81_v46 = vld [vmem:[#allocation2 + $0x28] sm:$0xff] }
  0x5e   :  { %1562 = vmatpush3.msra.mxu0 %v81_v46 }
  0x5f   :  { %1809 = vxpose.xlu0.b32.cont [10/16] %v1808_v57, 128  ;;  %1563 = vmatprep.subr.mxu0 %v2329_v47  ;;  %v2372_v57 = vld [vmem:[#allocation8 + $0x38] sm:$0xff] }
  0x60   :  { %1644 = vmatpush3.xpose.msra.mxu1 %v378_v50  ;;  %1564 = vmatpush3.msra.mxu0 %v80_v45  ;;  %v2338_v50 = vld [vmem:[#allocation2 + $0x90] sm:$0xff] }
  0x61   :  { %1645 = vmatprep.subr.mxu1 %v393_v51  ;;  %1565 = vmatprep.subr.mxu0 %v2332_v48  ;;  %v2342_v51 = vld [vmem:[#allocation2 + $0x88] sm:$0xff] }
  0x62   :  { %1566 = vmatpush3.msra.mxu0 %v79_v38 }
  0x63   :  { %1811 = vxpose.xlu0.b32.cont [11/16] %v1810_v62, 128  ;;  %1567 = vmatprep.subr.mxu0 %v2338_v50  ;;  %v2397_v62 = vld [vmem:[#allocation8 + $0x10] sm:$0xff] }
  0x64   :  { %1646 = vmatpush3.xpose.msra.mxu1 %v377_v55  ;;  %1568 = vmatpush3.msra.mxu0 %v78_v30  ;;  %v2359_v55 = vld [vmem:[#allocation8 + $0x50] sm:$0xff] }
  0x65   :  { %1647 = vmatprep.subr.mxu1 %v392_v56  ;;  %1569 = vmatprep.subr.mxu0 %v2342_v51  ;;  %v2363_v56 = vld [vmem:[#allocation8 + $0x48] sm:$0xff] }
  0x66   :  { %1570 = vmatpush3.msra.mxu0 %v2285_v21 }
  0x67   :  { %1813 = vxpose.xlu0.b32.cont [12/16] %v1812_v5, 128  ;;  %1571 = vmatprep.subr.mxu0 %v2348_v53  ;;  %v2422_v5 = vld [vmem:[#allocation8 + $0xe8] sm:$0xff] }
  0x68   :  { %1648 = vmatpush3.xpose.msra.mxu1 %v376_v60  ;;  %1572 = vmatpush3.msra.mxu0 %v2255_v7  ;;  %v2387_v60 = vld [vmem:[#allocation8 + $0x20] sm:$0xff] }
  0x69   :  { %1649 = vmatprep.subr.mxu1 %v391_v61  ;;  %1207 = vmatprep.subr.mxu0 %v2198_v20  ;;  %v2392_v61 = vld [vmem:[#allocation8 + $0x18] sm:$0xff] }
  0x6b   :  { %1815 = vxpose.xlu0.b32.cont [13/16] %v1814_v14, 128  ;;  %v2462_v14 = vld [vmem:[#allocation8 + $0xb0] sm:$0xff] }
  0x6c   :  { %1650 = vmatpush3.xpose.msra.mxu1 %v375_v2  ;;  %v2412_v2 = vld [vmem:[#allocation8 + $0xf8] sm:$0xff] }
  0x6d   :  { %1651 = vmatprep.subr.mxu1 %v390_v4  ;;  %v2417_v4 = vld [vmem:[#allocation8 + $0xf0] sm:$0xff] }
  0x6f   :  { %1817 = vxpose.xlu0.b32.cont [14/16] %v1816_v23, 128 }
  0x70   :  { %1652 = vmatpush3.xpose.msra.mxu1 %v374_v12  ;;  %v2442_v12 = vld [vmem:[#allocation8 + $0xd0] sm:$0xff] }
  0x71   :  { %1717 = vmatprep.subr.mxu1 %v2198_v20 }
  0x73   :  { %1654 = vmatmul.mubr.f32.vlgmr.msra.gmra.mxu1 %v2255_v7  ;;  %1819 = vxpose.xlu0.b32.cont [15/16] %v1818_v32, 128  ;;  %v2367_v7 = vld [vmem:[#allocation8 + $0x40] sm:$0xff] }
  0x74   :  { %1655 = vmatprep.mubr.f32.mxu1 %v2285_v21  ;;  %1749 = vmatpush1.msra.mxu1 %v2302_v29 }
  0x75   :  { %1718 = vmatprep.subr.mxu1 %v2198_v20 }
  0x76   :  { %1750 = vmatpush1.msra.mxu1 %v2325_v44 }
  0x77   :  { %1656 = vmatmul.mubr.f32.gmra.mxu1 %v2285_v21  ;;  %1821 = vxpose.xlu0.b32.end [16/16] %v1820_v40, 128  ;;  %v2467_v21 = vld [vmem:[#allocation8 + $0xa8] sm:$0xff] }
  0x78   :  { %1657 = vmatprep.mubr.f32.mxu1 %v78_v30  ;;  %1719 = vmatprep.subr.mxu1 %v2198_v20 }
  0x79   :  { %1751 = vmatpush1.msra.mxu1 %v2335_v49 }
  0x7a   :  { %1720 = vmatprep.subr.mxu1 %v2198_v20 }
  0x7b   :  { %1658 = vmatmul.mubr.f32.gmra.mxu1 %v78_v30 }
  0x7c   :  { %1659 = vmatprep.mubr.f32.mxu1 %v79_v38  ;;  %1752 = vmatpush1.msra.mxu1 %v2345_v52 }
  0x7d   :  { %1721 = vmatprep.subr.mxu1 %v2198_v20 }
  0x7e   :  { %1753 = vmatpush1.msra.mxu1 %v2355_v54 }
  0x7f   :  { %1660 = vmatmul.mubr.f32.gmra.mxu1 %v79_v38  ;;  %1722 = vmatprep.subr.mxu1 %v2198_v20 }
  0x80   :  { %1661 = vmatprep.mubr.f32.mxu1 %v80_v45  ;;  %1754 = vmatpush1.msra.mxu1 %v2359_v55 }
  0x81   :  { %1723 = vmatprep.subr.mxu1 %v2198_v20 }
  0x82   :  { %1755 = vmatpush1.msra.mxu1 %v2363_v56 }
  0x83   :  { %1662 = vmatmul.mubr.f32.gmra.mxu1 %v80_v45  ;;  %1724 = vmatprep.subr.mxu1 %v2198_v20 }
  0x84   :  { %1663 = vmatprep.mubr.f32.mxu1 %v81_v46  ;;  %1756 = vmatpush1.msra.mxu1 %v2367_v7 }
  0x85   :  { %1725 = vmatprep.subr.mxu1 %v2198_v20 }
  0x86   :  { %1757 = vmatpush1.msra.mxu1 %v2372_v57 }
  0x87   :  { %1664 = vmatmul.mubr.f32.gmra.mxu1 %v81_v46  ;;  %1726 = vmatprep.subr.mxu1 %v2198_v20 }
  0x88   :  { %1665 = vmatprep.mubr.f32.mxu1 %v82_v42  ;;  %1758 = vmatpush1.msra.mxu1 %v2377_v58 }
  0x89   :  { %1727 = vmatprep.subr.mxu1 %v2198_v20 }
  0x8a   :  { %1759 = vmatpush1.msra.mxu1 %v2382_v59 }
  0x8b   :  { %1666 = vmatmul.mubr.f32.gmra.mxu1 %v82_v42  ;;  %1728 = vmatprep.subr.mxu1 %v2198_v20 }
  0x8c   :  { %1667 = vmatprep.mubr.f32.mxu1 %v83_v39  ;;  %1760 = vmatpush1.msra.mxu1 %v2387_v60 }
  0x8d   :  { %1729 = vmatprep.subr.mxu1 %v2198_v20 }
  0x8e   :  { %1761 = vmatpush1.msra.mxu1 %v2392_v61 }
  0x8f   :  { %1668 = vmatmul.mubr.f32.gmra.mxu1 %v83_v39  ;;  %1730 = vmatprep.subr.mxu1 %v2198_v20 }
  0x90   :  { %1669 = vmatprep.mubr.f32.mxu1 %v2312_v34  ;;  %1762 = vmatpush1.msra.mxu1 %v2397_v62 }
  0x91   :  { %1731 = vmatprep.subr.mxu1 %v2198_v20 }
  0x92   :  { %1763 = vmatpush1.msra.mxu1 %v2402_v63 }
  0x93   :  { %1670 = vmatmul.mubr.f32.gmra.mxu1 %v2312_v34  ;;  %1732 = vmatprep.subr.mxu1 %v2198_v20 }
  0x94   :  { %1671 = vmatprep.mubr.f32.mxu1 %v2304_v31  ;;  %1764 = vmatpush1.msra.mxu1 %v2407_v0 }
  0x95   :  { %1733 = vmatprep.subr.mxu1 %v2198_v20 }
  0x96   :  { %1765 = vmatpush2.msra.mxu1 %v2412_v2 }
  0x97   :  { %1672 = vmatmul.mubr.f32.gmra.mxu1 %v2304_v31  ;;  %1734 = vmatprep.subr.mxu1 %v2198_v20 }
  0x98   :  { %1673 = vmatprep.mubr.f32.mxu1 %v2295_v25  ;;  %1766 = vmatpush2.msra.mxu1 %v2417_v4 }
  0x99   :  { %1735 = vmatprep.subr.mxu1 %v2198_v20 }
  0x9a   :  { %1767 = vmatpush2.msra.mxu1 %v2422_v5 }
  0x9b   :  { %1674 = vmatmul.mubr.f32.gmra.mxu1 %v2295_v25  ;;  %1736 = vmatprep.subr.mxu1 %v2198_v20 }
  0x9c   :  { %1675 = vmatprep.mubr.f32.mxu1 %v2287_v22  ;;  %1768 = vmatpush2.msra.mxu1 %v2427_v9 }
  0x9d   :  { %1737 = vmatprep.subr.mxu1 %v2198_v20 }
  0x9e   :  { %1769 = vmatpush2.msra.mxu1 %v2438_v10 }
  0x9f   :  { %1676 = vmatmul.mubr.f32.gmra.mxu1 %v2287_v22  ;;  %1738 = vmatprep.subr.mxu1 %v2198_v20  ;;  %v2472_v22 = vld [vmem:[#allocation8 + $0xa0] sm:$0xff] }
  0xa0   :  { %1677 = vmatprep.mubr.f32.mxu1 %v2278_v16  ;;  %1770 = vmatpush2.msra.mxu1 %v2442_v12 }
  0xa1   :  { %1739 = vmatprep.subr.mxu1 %v2198_v20 }
  0xa3   :  { %1678 = vmatmul.mubr.f32.gmra.mxu1 %v2278_v16 }
  0xa4   :  { %1679 = vmatprep.mubr.f32.mxu1 %v2272_v13 }
  0xa7   :  { %1680 = vmatmul.mubr.f32.gmra.mxu1 %v2272_v13  ;;  %v2457_v13 = vld [vmem:[#allocation8 + $0xb8] sm:$0xff] }
  0xa8   :  { %1681 = vmatprep.mubr.f32.mxu1 %v2266_v8 }
  0xab   :  { %1682 = vmatmul.mubr.f32.gmra.mxu1 %v2266_v8  ;;  %v2447_v8 = vld [vmem:[#allocation8 + $0xc8] sm:$0xff] }
  0xac   :  { %1683 = vmatprep.mubr.f32.mxu1 %v2260_v3  ;;  %1771 = vmatpush2.msra.mxu1 %v2447_v8 }
  0xad   :  { %1740 = vmatprep.subr.mxu1 %v2198_v20 }
  0xaf   :  { %1684 = vmatmul.mubr.f32.gmra.mxu1 %v2260_v3  ;;  %v2452_v3 = vld [vmem:[#allocation8 + $0xc0] sm:$0xff] }
  0xb0   :  { %1685 = vmatprep.mubr.f32.mxu1 %v2348_v53  ;;  %1772 = vmatpush2.msra.mxu1 %v2452_v3 }
  0xb1   :  { %1741 = vmatprep.subr.mxu1 %v2198_v20 }
  0xb2   :  { %1773 = vmatpush2.msra.mxu1 %v2457_v13 }
  0xb3   :  { %1686 = vmatmul.mubr.f32.gmra.mxu1 %v2348_v53  ;;  %1742 = vmatprep.subr.mxu1 %v2198_v20 }
  0xb4   :  { %1687 = vmatprep.mubr.f32.mxu1 %v2342_v51  ;;  %1774 = vmatpush2.msra.mxu1 %v2462_v14 }
  0xb5   :  { %1743 = vmatprep.subr.mxu1 %v2198_v20 }
  0xb6   :  { %1775 = vmatpush2.msra.mxu1 %v2467_v21 }
  0xb7   :  { %1688 = vmatmul.mubr.f32.gmra.mxu1 %v2342_v51  ;;  %v1822_v16 = vpop.trf.xlu0  ;;  %1744 = vmatprep.subr.mxu1 %v2198_v20 }
  0xb8   :  { %1689 = vmatprep.mubr.f32.mxu1 %v2338_v50  ;;  %v1823_v17 = vunpack.i.l.bf16 %v1822_v16  ;;  %v1826_v18 = vunpack.i.h.bf16 %v1822_v16  ;;  %1776 = vmatpush2.msra.mxu1 %v2472_v22 }
  0xb9   :  { %1745 = vmatprep.subr.mxu1 %v2198_v20 }
  0xba   :  { %273 = vmatprep.mubr.f32.mxu0 %v1823_v17 }
  0xbb   :  { %1690 = vmatmul.mubr.f32.gmra.mxu1 %v2338_v50  ;;  %v1827_v23 = vpop.trf.xlu0  ;;  %274 = vmatmul.mubr.f32.vlgmr.msra.gmra.mxu0 %v1826_v18 }
  0xbc   :  { %1691 = vmatprep.mubr.f32.mxu1 %v2332_v48  ;;  %1208 = vmatpush1.msra.mxu0 %v2302_v29  ;;  %v1828_v25 = vunpack.i.l.bf16 %v1827_v23  ;;  %v1831_v26 = vunpack.i.h.bf16 %v1827_v23 }
  0xbd   :  { %1209 = vmatprep.subr.mxu0 %v2198_v20 }
  0xbe   :  { %278 = vmatprep.mubr.f32.mxu0 %v1828_v25  ;;  %1210 = vmatpush1.msra.mxu0 %v2325_v44 }
  0xbf   :  { %1692 = vmatmul.mubr.f32.gmra.mxu1 %v2332_v48  ;;  %v1832_v27 = vpop.trf.xlu0  ;;  %279 = vmatmul.mubr.f32.gmra.mxu0 %v1831_v26 }
  0xc0   :  { %1693 = vmatprep.mubr.f32.mxu1 %v2329_v47  ;;  %1211 = vmatprep.subr.mxu0 %v2198_v20  ;;  %v1833_v30 = vunpack.i.l.bf16 %v1832_v27  ;;  %v1836_v31 = vunpack.i.h.bf16 %v1832_v27 }
  0xc1   :  { %1212 = vmatpush1.msra.mxu0 %v2335_v49 }
  0xc2   :  { %1213 = vmatprep.subr.mxu0 %v2198_v20  ;;  %283 = vmatprep.mubr.f32.mxu0 %v1833_v30 }
  0xc3   :  { %1694 = vmatmul.mubr.f32.gmra.mxu1 %v2329_v47  ;;  %1214 = vmatpush1.msra.mxu0 %v2345_v52  ;;  %v1837_v29 = vpop.trf.xlu0 }
  0xc4   :  { %1695 = vmatprep.mubr.f32.mxu1 %v2323_v43  ;;  %284 = vmatmul.mubr.f32.gmra.mxu0 %v1836_v31  ;;  %v1838_v32 = vunpack.i.l.bf16 %v1837_v29  ;;  %v1841_v34 = vunpack.i.h.bf16 %v1837_v29 }
  0xc5   :  { %1215 = vmatprep.subr.mxu0 %v2198_v20 }
  0xc6   :  { %1216 = vmatpush1.msra.mxu0 %v2355_v54  ;;  %288 = vmatprep.mubr.f32.mxu0 %v1838_v32 }
  0xc7   :  { %1696 = vmatmul.mubr.f32.gmra.mxu1 %v2323_v43  ;;  %1217 = vmatprep.subr.mxu0 %v2198_v20  ;;  %v1842_v35 = vpop.trf.xlu0 }
  0xc8   :  { %1697 = vmatprep.mubr.f32.mxu1 %v2320_v41  ;;  %1218 = vmatpush1.msra.mxu0 %v2359_v55  ;;  %v1843_v36 = vunpack.i.l.bf16 %v1842_v35  ;;  %v1846_v38 = vunpack.i.h.bf16 %v1842_v35 }
  0xc9   :  { %289 = vmatmul.mubr.f32.gmra.mxu0 %v1841_v34  ;;  %1219 = vmatprep.subr.mxu0 %v2198_v20 }
  0xca   :  { %1220 = vmatpush1.msra.mxu0 %v2363_v56  ;;  %293 = vmatprep.mubr.f32.mxu0 %v1843_v36  ;;  %v425_v56 = vld [vmem:[#allocation8 + $0x98] sm:$0xff] }
  0xcb   :  { %1698 = vmatmul.mubr.f32.gmra.mxu1 %v2320_v41  ;;  %1221 = vmatprep.subr.mxu0 %v2198_v20  ;;  %v1847_v39 = vpop.trf.xlu0 }
  0xcc   :  { %1699 = vmatprep.mubr.f32.mxu1 %v2315_v37  ;;  %1222 = vmatpush1.msra.mxu0 %v2367_v7  ;;  %v1851_v40 = vunpack.i.h.bf16 %v1847_v39 }
  0xcd   :  { %294 = vmatmul.mubr.f32.gmra.mxu0 %v1846_v38  ;;  %1223 = vmatprep.subr.mxu0 %v2198_v20 }
  0xce   :  { %1224 = vmatpush1.msra.mxu0 %v2372_v57  ;;  %1777 = vmatpush2.msra.mxu1 %v425_v56 }
  0xcf   :  { %1700 = vmatmul.mubr.f32.gmra.mxu1 %v2315_v37  ;;  %v1848_v37 = vunpack.i.l.bf16 %v1847_v39  ;;  %1225 = vmatprep.subr.mxu0 %v2198_v20  ;;  %v1852_v41 = vpop.trf.xlu0 }
  0xd0   :  { %1701 = vmatprep.mubr.f32.mxu1 %v2308_v33  ;;  %1226 = vmatpush1.msra.mxu0 %v2377_v58  ;;  %v1856_v42 = vunpack.i.h.bf16 %v1852_v41  ;;  %v424_v58 = vld [vmem:[#allocation8 + $0x90] sm:$0xff] }
  0xd1   :  { %298 = vmatprep.mubr.f32.mxu0 %v1848_v37  ;;  %1227 = vmatprep.subr.mxu0 %v2198_v20 }
  0xd2   :  { %299 = vmatmul.mubr.f32.gmra.mxu0 %v1851_v40  ;;  %1746 = vmatprep.subr.mxu1 %v2198_v20 }
  0xd3   :  { %1702 = vmatmul.mubr.f32.gmra.mxu1 %v2308_v33  ;;  %1228 = vmatpush1.msra.mxu0 %v2382_v59  ;;  %v1853_v33 = vunpack.i.l.bf16 %v1852_v41  ;;  %v1857_v43 = vpop.trf.xlu0 }
  0xd4   :  { %1703 = vmatprep.mubr.f32.mxu1 %v2299_v28  ;;  %1229 = vmatprep.subr.mxu0 %v2198_v20  ;;  %v1861_v44 = vunpack.i.h.bf16 %v1857_v43 }
  0xd5   :  { %303 = vmatprep.mubr.f32.mxu0 %v1853_v33  ;;  %1230 = vmatpush1.msra.mxu0 %v2387_v60 }
  0xd6   :  { %304 = vmatmul.mubr.f32.gmra.mxu0 %v1856_v42  ;;  %1231 = vmatprep.subr.mxu0 %v2198_v20 }
  0xd7   :  { %1704 = vmatmul.mubr.f32.gmra.mxu1 %v2299_v28  ;;  %1232 = vmatpush1.msra.mxu0 %v2392_v61  ;;  %v1858_v28 = vunpack.i.l.bf16 %v1857_v43  ;;  %v1862_v45 = vpop.trf.xlu0 }
  0xd8   :  { %1705 = vmatprep.mubr.f32.mxu1 %v2291_v24  ;;  %1233 = vmatprep.subr.mxu0 %v2198_v20  ;;  %v1866_v46 = vunpack.i.h.bf16 %v1862_v45 }
  0xd9   :  { %308 = vmatprep.mubr.f32.mxu0 %v1858_v28  ;;  %1234 = vmatpush1.msra.mxu0 %v2397_v62  ;;  %v423_v62 = vld [vmem:[#allocation8 + $0x88] sm:$0xff] }
  0xda   :  { %309 = vmatmul.mubr.f32.gmra.mxu0 %v1861_v44  ;;  %1235 = vmatprep.subr.mxu0 %v2198_v20 }
  0xdb   :  { %1706 = vmatmul.mubr.f32.gmra.mxu1 %v2291_v24  ;;  %1236 = vmatpush1.msra.mxu0 %v2402_v63  ;;  %v1863_v24 = vunpack.i.l.bf16 %v1862_v45  ;;  %v1867_v47 = vpop.trf.xlu0 }
  0xdc   :  { %1707 = vmatprep.mubr.f32.mxu1 %v2281_v19  ;;  %1237 = vmatprep.subr.mxu0 %v2198_v20  ;;  %v1871_v48 = vunpack.i.h.bf16 %v1867_v47 }
  0xdd   :  { %313 = vmatprep.mubr.f32.mxu0 %v1863_v24  ;;  %1238 = vmatpush1.msra.mxu0 %v2407_v0 }
  0xde   :  { %314 = vmatmul.mubr.f32.gmra.mxu0 %v1866_v46  ;;  %1239 = vmatprep.subr.mxu0 %v2198_v20 }
  0xdf   :  { %1708 = vmatmul.mubr.f32.gmra.mxu1 %v2281_v19  ;;  %1240 = vmatpush2.msra.mxu0 %v2412_v2  ;;  %v1868_v19 = vunpack.i.l.bf16 %v1867_v47  ;;  %v1872_v49 = vpop.trf.xlu0  ;;  %v422_v2 = vld [vmem:[#allocation8 + $0x80] sm:$0xff] }
  0xe0   :  { %1709 = vmatprep.mubr.f32.mxu1 %v2275_v15  ;;  %1241 = vmatprep.subr.mxu0 %v2198_v20  ;;  %v1876_v50 = vunpack.i.h.bf16 %v1872_v49 }
  0xe1   :  { %318 = vmatprep.mubr.f32.mxu0 %v1868_v19  ;;  %1242 = vmatpush2.msra.mxu0 %v2417_v4 }
  0xe2   :  { %319 = vmatmul.mubr.f32.gmra.mxu0 %v1871_v48  ;;  %1243 = vmatprep.subr.mxu0 %v2198_v20 }
  0xe3   :  { %1710 = vmatmul.mubr.f32.gmra.mxu1 %v2275_v15  ;;  %1244 = vmatpush2.msra.mxu0 %v2422_v5  ;;  %v1873_v15 = vunpack.i.l.bf16 %v1872_v49  ;;  %v1877_v51 = vpop.trf.xlu0 }
  0xe4   :  { %1711 = vmatprep.mubr.f32.mxu1 %v2269_v11  ;;  %1245 = vmatprep.subr.mxu0 %v2198_v20  ;;  %v1881_v52 = vunpack.i.h.bf16 %v1877_v51 }
  0xe5   :  { %323 = vmatprep.mubr.f32.mxu0 %v1873_v15  ;;  %1246 = vmatpush2.msra.mxu0 %v2427_v9 }
  0xe6   :  { %324 = vmatmul.mubr.f32.gmra.mxu0 %v1876_v50  ;;  %1247 = vmatprep.subr.mxu0 %v2198_v20 }
  0xe7   :  { %1712 = vmatmul.mubr.f32.gmra.mxu1 %v2269_v11  ;;  %1248 = vmatpush2.msra.mxu0 %v2438_v10  ;;  %v1878_v11 = vunpack.i.l.bf16 %v1877_v51  ;;  %v1882_v53 = vpop.trf.xlu0 }
  0xe8   :  { %1713 = vmatprep.mubr.f32.mxu1 %v2263_v6  ;;  %1249 = vmatprep.subr.mxu0 %v2198_v20  ;;  %v1886_v54 = vunpack.i.h.bf16 %v1882_v53 }
  0xe9   :  { %328 = vmatprep.mubr.f32.mxu0 %v1878_v11  ;;  %1250 = vmatpush2.msra.mxu0 %v2442_v12 }
  0xea   :  { %329 = vmatmul.mubr.f32.gmra.mxu0 %v1881_v52  ;;  %1251 = vmatprep.subr.mxu0 %v2198_v20 }
  0xeb   :  { %1714 = vmatmul.mubr.f32.gmra.mxu1 %v2263_v6  ;;  %1252 = vmatpush2.msra.mxu0 %v2447_v8  ;;  %v1883_v6 = vunpack.i.l.bf16 %v1882_v53  ;;  %v1887_v55 = vpop.trf.xlu0 }
  0xec   :  { %1715 = vmatprep.mubr.f32.mxu1 %v2258_v1  ;;  %1253 = vmatprep.subr.mxu0 %v2198_v20  ;;  %v1888_v7 = vunpack.i.l.bf16 %v1887_v55 }
  0xed   :  { %333 = vmatprep.mubr.f32.mxu0 %v1883_v6  ;;  %1254 = vmatpush2.msra.mxu0 %v2452_v3 }
  0xee   :  { %334 = vmatmul.mubr.f32.gmra.mxu0 %v1886_v54  ;;  %1255 = vmatprep.subr.mxu0 %v2198_v20 }
  0xef   :  { %1716 = vmatmul.mubr.f32.gmra.mxu1 %v2258_v1  ;;  %1256 = vmatpush2.msra.mxu0 %v2457_v13  ;;  %v1891_v1 = vunpack.i.h.bf16 %v1887_v55  ;;  %v1892_v57 = vpop.trf.xlu0 }
  0xf0   :  { %1257 = vmatprep.subr.mxu0 %v2198_v20  ;;  %338 = vmatprep.mubr.f32.mxu0 %v1888_v7  ;;  %v1893_v59 = vunpack.i.l.bf16 %v1892_v57  ;;  %v1896_v60 = vunpack.i.h.bf16 %v1892_v57 }
  0xf1   :  { %1258 = vmatpush2.msra.mxu0 %v2462_v14  ;;  %1778 = vmatpush2.msra.mxu1 %v424_v58 }
  0xf2   :  { %339 = vmatmul.mubr.f32.gmra.mxu0 %v1891_v1  ;;  %1259 = vmatprep.subr.mxu0 %v2198_v20 }
  0xf3   :  { %1260 = vmatpush2.msra.mxu0 %v2467_v21  ;;  %1747 = vmatprep.subr.mxu1 %v2198_v20  ;;  %v1897_v61 = vpop.trf.xlu0 }
  0xf4   :  { %1261 = vmatprep.subr.mxu0 %v2198_v20  ;;  %343 = vmatprep.mubr.f32.mxu0 %v1893_v59  ;;  %v1901_v63 = vunpack.i.h.bf16 %v1897_v61  ;;  %v1898_v0 = vunpack.i.l.bf16 %v1897_v61 }
  0xf5   :  { %1262 = vmatpush2.msra.mxu0 %v2472_v22  ;;  %1779 = vmatpush2.msra.mxu1 %v423_v62 }
  0xf6   :  { %344 = vmatmul.mubr.f32.gmra.mxu0 %v1896_v60  ;;  %1263 = vmatprep.subr.mxu0 %v2198_v20 }
  0xf7   :  { %1264 = vmatpush2.msra.mxu0 %v425_v56  ;;  %1748 = vmatprep.subr.mxu1 %v2198_v20 }
  0xf8   :  { %1265 = vmatprep.subr.mxu0 %v2198_v20  ;;  %348 = vmatprep.mubr.f32.mxu0 %v1898_v0 }
  0xf9   :  { %1266 = vmatpush2.msra.mxu0 %v424_v58  ;;  %1780 = vmatpush2.msra.mxu1 %v422_v2 }
  0xfa   :  { %349 = vmatmul.mubr.f32.gmra.mxu0 %v1901_v63  ;;  %1267 = vmatprep.subr.mxu0 %v2198_v20 }
  0xfb   :  { %1268 = vmatpush2.msra.mxu0 %v423_v62 }
  0xfc   :  { %1269 = vmatprep.subr.mxu0 %v2198_v20 }
  0xfd   :  { %1270 = vmatpush2.msra.mxu0 %v422_v2 }
 0x133   :  { %v504_v4 = vpop.f32.mrf.mxu1 }
 0x134   :  { %v695_v5 = vmax.f32 %v504_v4, 0.0 }
 0x135   :  { %v506_v9 = vpop.f32.mrf.mxu1 }
 0x136   :  { %1902 = vrsqrt.f32 %v695_v5  ;;  %v696_v10 = vmax.f32 %v506_v9, 0.0  ;;  %vm761_vm0 = vcmp.eq.f32.partialorder %v695_v5, inf  ;;  %vm763_vm1 = vcmp.eq.f32.partialorder %v695_v5, 0.0 }
 0x137   :  { %v510_v12 = vpop.f32.mrf.mxu1  ;;  %v764_v34 = vand.u32 2147483648, %v695_v5 }
 0x138   :  { %1904 = vrsqrt.f32 %v696_v10  ;;  %v2562_v8 = vmax.f32 %v510_v12, 0.0  ;;  %vm768_vm2 = vcmp.eq.f32.partialorder %v696_v10, inf  ;;  %vm770_vm3 = vcmp.eq.f32.partialorder %v696_v10, 0.0 }
 0x139   :  { %v512_v3 = vpop.f32.mrf.mxu1  ;;  %v771_v32 = vand.u32 2147483648, %v696_v10 }
 0x13a   :  { %1906 = vrsqrt.f32 %v2562_v8  ;;  %v2565_v13 = vmax.f32 %v512_v3, 0.0  ;;  %vm775_vm4 = vcmp.eq.f32.partialorder %v2562_v8, inf  ;;  %vm777_vm6 = vcmp.eq.f32.partialorder %v2562_v8, 0.0 }
 0x13b   :  { %v516_v14 = vpop.f32.mrf.mxu1  ;;  %v778_v40 = vand.u32 2147483648, %v2562_v8 }
 0x13c   :  { %1908 = vrsqrt.f32 %v2565_v13  ;;  %v2568_v16 = vmax.f32 %v516_v14, 0.0  ;;  %vm782_vm5 = vcmp.eq.f32.partialorder %v2565_v13, inf  ;;  %vm784_vm7 = vcmp.eq.f32.partialorder %v2565_v13, 0.0 }
 0x13d   :  { %v518_v20 = vpop.f32.mrf.mxu1  ;;  %v785_v45 = vand.u32 2147483648, %v2565_v13 }
 0x13e   :  { %1910 = vrsqrt.f32 %v2568_v16  ;;  %v2571_v17 = vmax.f32 %v518_v20, 0.0  ;;  %vm789_vm8 = vcmp.eq.f32.partialorder %v2568_v16, inf  ;;  %vm791_vm10 = vcmp.eq.f32.partialorder %v2568_v16, 0.0 }
 0x13f   :  { %v522_v18 = vpop.f32.mrf.mxu1  ;;  %v792_v15 = vand.u32 2147483648, %v2568_v16 }
 0x140   :  { %1912 = vrsqrt.f32 %v2571_v17  ;;  %v2574_v21 = vmax.f32 %v522_v18, 0.0  ;;  %vm796_vm9 = vcmp.eq.f32.partialorder %v2571_v17, inf  ;;  %vm798_vm11 = vcmp.eq.f32.partialorder %v2571_v17, 0.0 }
 0x141   :  { %v524_v22 = vpop.f32.mrf.mxu1  ;;  %v799_v54 = vand.u32 2147483648, %v2571_v17 }
 0x142   :  { %1914 = vrsqrt.f32 %v2574_v21  ;;  %v2577_v23 = vmax.f32 %v524_v22, 0.0  ;;  %vm803_vm12 = vcmp.eq.f32.partialorder %v2574_v21, inf  ;;  %vm805_vm14 = vcmp.eq.f32.partialorder %v2574_v21, 0.0 }
 0x143   :  { %v1903_v25 = vpop.eup %1902  ;;  %v528_v26 = vpop.f32.mrf.mxu1  ;;  %v806_v59 = vand.u32 2147483648, %v2574_v21 }
 0x144   :  { %1916 = vrsqrt.f32 %v2577_v23  ;;  %v2580_v27 = vmax.f32 %v528_v26, 0.0  ;;  %v760_v30 = vmul.f32 %v1903_v25, %v695_v5  ;;  %vm810_vm13 = vcmp.eq.f32.partialorder %v2577_v23, inf }
 0x145   :  { %v1905_v31 = vpop.eup %1904  ;;  %v530_v29 = vpop.f32.mrf.mxu1  ;;  %vm812_vm15 = vcmp.eq.f32.partialorder %v2577_v23, 0.0  ;;  %v813_v4 = vand.u32 2147483648, %v2577_v23 }
 0x146   :  { %1918 = vrsqrt.f32 %v2580_v27  ;;  %v2583_v35 = vmax.f32 %v530_v29, 0.0  ;;  %v767_v36 = vmul.f32 %v1905_v31, %v696_v10  ;;  %v762_v37 = vsel %vm761_vm0, %v695_v5, %v760_v30 }
 0x147   :  { %v1907_v38 = vpop.eup %1906  ;;  %v534_v39 = vpop.f32.mrf.mxu1  ;;  %v765_v46 = vsel %vm763_vm1, %v764_v34, %v762_v37  ;;  %vm817_vm0 = vcmp.eq.f32.partialorder %v2580_v27, inf }
 0x148   :  { %1920 = vrsqrt.f32 %v2583_v35  ;;  %v2591_v41 = vmax.f32 %v534_v39, 0.0  ;;  %v769_v33 = vsel %vm768_vm2, %v696_v10, %v767_v36  ;;  %v774_v42 = vmul.f32 %v1907_v38, %v2562_v8 }
 0x149   :  { %v1909_v43 = vpop.eup %1908  ;;  %v536_v28 = vpop.f32.mrf.mxu1  ;;  %v772_v44 = vsel %vm770_vm3, %v771_v32, %v769_v33  ;;  %vm824_vm1 = vcmp.eq.f32.partialorder %v2583_v35, inf  ;;  %vm819_vm2 = vcmp.eq.f32.partialorder %v2580_v27, 0.0  ;;  %vm826_vm3 = vcmp.eq.f32.partialorder %v2583_v35, 0.0 }
 0x14a   :  { %1922 = vrsqrt.f32 %v2591_v41  ;;  %v2600_v24 = vmax.f32 %v536_v28, 0.0  ;;  %1271 = vmatprep.mubr.f32.mxu0 %v772_v44  ;;  %v781_v47 = vmul.f32 %v1909_v43, %v2565_v13  ;;  %v776_v49 = vsel %vm775_vm4, %v2562_v8, %v774_v42 }
 0x14b   :  { %v1911_v19 = vpop.eup %1910  ;;  %v540_v48 = vpop.f32.mrf.mxu1  ;;  %1272 = vmatmul.mubr.f32.vlgmr.msra.gmra.mxu0 %v765_v46  ;;  %v779_v56 = vsel %vm777_vm6, %v778_v40, %v776_v49  ;;  %v827_v25 = vand.u32 2147483648, %v2583_v35  ;;  %vm831_vm4 = vcmp.eq.f32.partialorder %v2591_v41, inf  ;;  %vm833_vm6 = vcmp.eq.f32.partialorder %v2591_v41, 0.0 }
 0x14c   :  { %1924 = vrsqrt.f32 %v2600_v24  ;;  %v2611_v50 = vmax.f32 %v540_v48, 0.0  ;;  %v783_v51 = vsel %vm782_vm5, %v2565_v13, %v781_v47  ;;  %v788_v11 = vmul.f32 %v1911_v19, %v2568_v16 }
 0x14d   :  { %v1913_v52 = vpop.eup %1912  ;;  %v542_v53 = vpop.f32.mrf.mxu1  ;;  %v786_v6 = vsel %vm784_vm7, %v785_v45, %v783_v51  ;;  %v820_v13 = vand.u32 2147483648, %v2580_v27  ;;  %vm838_vm5 = vcmp.eq.f32.partialorder %v2600_v24, inf  ;;  %v834_v34 = vand.u32 2147483648, %v2591_v41 }
 0x14e   :  { %1926 = vrsqrt.f32 %v2611_v50  ;;  %v2623_v55 = vmax.f32 %v542_v53, 0.0  ;;  %1276 = vmatprep.mubr.f32.mxu0 %v786_v6  ;;  %v795_v7 = vmul.f32 %v1913_v52, %v2571_v17  ;;  %v790_v58 = vsel %vm789_vm8, %v2568_v16, %v788_v11 }
 0x14f   :  { %v1915_v1 = vpop.eup %1914  ;;  %v546_v57 = vpop.f32.mrf.mxu1  ;;  %1277 = vmatmul.mubr.f32.gmra.mxu0 %v779_v56  ;;  %v793_v9 = vsel %vm791_vm10, %v792_v15, %v790_v58  ;;  %vm840_vm7 = vcmp.eq.f32.partialorder %v2600_v24, 0.0  ;;  %v841_v33 = vand.u32 2147483648, %v2600_v24  ;;  %vm845_vm8 = vcmp.eq.f32.partialorder %v2611_v50, inf }
 0x150   :  { %1928 = vrsqrt.f32 %v2623_v55  ;;  %v2635_v60 = vmax.f32 %v546_v57, 0.0  ;;  %v797_v61 = vsel %vm796_vm9, %v2571_v17, %v795_v7  ;;  %v802_v62 = vmul.f32 %v1915_v1, %v2574_v21 }
 0x151   :  { %v1917_v63 = vpop.eup %1916  ;;  %v548_v0 = vpop.f32.mrf.mxu1  ;;  %v800_v2 = vsel %vm798_vm11, %v799_v54, %v797_v61  ;;  %vm852_vm9 = vcmp.eq.f32.partialorder %v2623_v55, inf  ;;  %vm847_vm10 = vcmp.eq.f32.partialorder %v2611_v50, 0.0  ;;  %v848_v46 = vand.u32 2147483648, %v2611_v50 }
 0x152   :  { %1930 = vrsqrt.f32 %v2635_v60  ;;  %v2647_v5 = vmax.f32 %v548_v0, 0.0  ;;  %1281 = vmatprep.mubr.f32.mxu0 %v800_v2  ;;  %v809_v10 = vmul.f32 %v1917_v63, %v2577_v23  ;;  %v804_v3 = vsel %vm803_vm12, %v2574_v21, %v802_v62 }
 0x153   :  { %v1919_v12 = vpop.eup %1918  ;;  %v552_v8 = vpop.f32.mrf.mxu1  ;;  %1282 = vmatmul.mubr.f32.gmra.mxu0 %v793_v9  ;;  %v807_v30 = vsel %vm805_vm14, %v806_v59, %v804_v3  ;;  %vm854_vm11 = vcmp.eq.f32.partialorder %v2623_v55, 0.0  ;;  %v855_v51 = vand.u32 2147483648, %v2623_v55  ;;  %vm859_vm12 = vcmp.eq.f32.partialorder %v2635_v60, inf }
 0x154   :  { %1932 = vrsqrt.f32 %v2647_v5  ;;  %v2659_v14 = vmax.f32 %v552_v8, 0.0  ;;  %v811_v16 = vsel %vm810_vm13, %v2577_v23, %v809_v10  ;;  %v816_v20 = vmul.f32 %v1919_v12, %v2580_v27 }
 0x155   :  { %v1921_v17 = vpop.eup %1920  ;;  %v554_v18 = vpop.f32.mrf.mxu1  ;;  %v814_v22 = vsel %vm812_vm15, %v813_v4, %v811_v16  ;;  %vm866_vm13 = vcmp.eq.f32.partialorder %v2647_v5, inf  ;;  %vm861_vm14 = vcmp.eq.f32.partialorder %v2635_v60, 0.0  ;;  %v862_v56 = vand.u32 2147483648, %v2635_v60 }
 0x156   :  { %1934 = vrsqrt.f32 %v2659_v14  ;;  %v2671_v26 = vmax.f32 %v554_v18, 0.0  ;;  %1286 = vmatprep.mubr.f32.mxu0 %v814_v22  ;;  %v823_v31 = vmul.f32 %v1921_v17, %v2583_v35  ;;  %v818_v23 = vsel %vm817_vm0, %v2580_v27, %v816_v20 }
 0x157   :  { %v1923_v29 = vpop.eup %1922  ;;  %v558_v32 = vpop.f32.mrf.mxu1  ;;  %1287 = vmatmul.mubr.f32.gmra.mxu0 %v807_v30  ;;  %v821_v43 = vsel %vm819_vm2, %v820_v13, %v818_v23  ;;  %vm868_vm15 = vcmp.eq.f32.partialorder %v2647_v5, 0.0  ;;  %v869_v61 = vand.u32 2147483648, %v2647_v5  ;;  %vm873_vm0 = vcmp.eq.f32.partialorder %v2659_v14, inf }
 0x158   :  { %1936 = vrsqrt.f32 %v2671_v26  ;;  %v2683_v36 = vmax.f32 %v558_v32, 0.0  ;;  %v825_v21 = vsel %vm824_vm1, %v2583_v35, %v823_v31  ;;  %v830_v38 = vmul.f32 %v1923_v29, %v2591_v41 }
 0x159   :  { %v1925_v39 = vpop.eup %1924  ;;  %v560_v37 = vpop.f32.mrf.mxu1  ;;  %v828_v40 = vsel %vm826_vm3, %v827_v25, %v825_v21  ;;  %vm880_vm1 = vcmp.eq.f32.partialorder %v2671_v26, inf  ;;  %vm875_vm2 = vcmp.eq.f32.partialorder %v2659_v14, 0.0  ;;  %v876_v9 = vand.u32 2147483648, %v2659_v14 }
 0x15a   :  { %1938 = vrsqrt.f32 %v2683_v36  ;;  %v2695_v42 = vmax.f32 %v560_v37, 0.0  ;;  %1291 = vmatprep.mubr.f32.mxu0 %v828_v40  ;;  %v837_v28 = vmul.f32 %v1925_v39, %v2600_v24  ;;  %v832_v35 = vsel %vm831_vm4, %v2591_v41, %v830_v38 }
 0x15b   :  { %v1927_v44 = vpop.eup %1926  ;;  %v564_v45 = vpop.f32.mrf.mxu1  ;;  %1292 = vmatmul.mubr.f32.gmra.mxu0 %v821_v43  ;;  %v835_v52 = vsel %vm833_vm6, %v834_v34, %v832_v35  ;;  %vm882_vm3 = vcmp.eq.f32.partialorder %v2671_v26, 0.0  ;;  %v883_v16 = vand.u32 2147483648, %v2671_v26  ;;  %vm887_vm4 = vcmp.eq.f32.partialorder %v2683_v36, inf }
 0x15c   :  { %1940 = vrsqrt.f32 %v2695_v42  ;;  %v2707_v47 = vmax.f32 %v564_v45, 0.0  ;;  %v839_v27 = vsel %vm838_vm5, %v2600_v24, %v837_v28  ;;  %v844_v19 = vmul.f32 %v1927_v44, %v2611_v50 }
 0x15d   :  { %v1929_v48 = vpop.eup %1928  ;;  %v566_v49 = vpop.f32.mrf.mxu1  ;;  %v842_v15 = vsel %vm840_vm7, %v841_v33, %v839_v27  ;;  %vm894_vm5 = vcmp.eq.f32.partialorder %v2695_v42, inf  ;;  %vm889_vm6 = vcmp.eq.f32.partialorder %v2683_v36, 0.0  ;;  %v890_v30 = vand.u32 2147483648, %v2683_v36 }
 0x15e   :  { %1942 = vrsqrt.f32 %v2707_v47  ;;  %v2719_v11 = vmax.f32 %v566_v49, 0.0  ;;  %1296 = vmatprep.mubr.f32.mxu0 %v842_v15  ;;  %v851_v53 = vmul.f32 %v1929_v48, %v2623_v55  ;;  %v846_v24 = vsel %vm845_vm8, %v2611_v50, %v844_v19 }
 0x15f   :  { %v1931_v6 = vpop.eup %1930  ;;  %v570_v54 = vpop.f32.mrf.mxu1  ;;  %1297 = vmatmul.mubr.f32.gmra.mxu0 %v835_v52  ;;  %v849_v63 = vsel %vm847_vm10, %v848_v46, %v846_v24  ;;  %vm896_vm7 = vcmp.eq.f32.partialorder %v2695_v42, 0.0  ;;  %v897_v21 = vand.u32 2147483648, %v2695_v42  ;;  %vm901_vm8 = vcmp.eq.f32.partialorder %v2707_v47, inf }
 0x160   :  { %1944 = vrsqrt.f32 %v2719_v11  ;;  %v2731_v7 = vmax.f32 %v570_v54, 0.0  ;;  %v853_v41 = vsel %vm852_vm9, %v2623_v55, %v851_v53  ;;  %v858_v1 = vmul.f32 %v1931_v6, %v2635_v60 }
 0x161   :  { %v1933_v57 = vpop.eup %1932  ;;  %v572_v58 = vpop.f32.mrf.mxu1  ;;  %v856_v59 = vsel %vm854_vm11, %v855_v51, %v853_v41  ;;  %vm908_vm9 = vcmp.eq.f32.partialorder %v2719_v11, inf  ;;  %vm903_vm10 = vcmp.eq.f32.partialorder %v2707_v47, 0.0  ;;  %v904_v43 = vand.u32 2147483648, %v2707_v47 }
 0x162   :  { %1946 = vrsqrt.f32 %v2731_v7  ;;  %v2743_v62 = vmax.f32 %v572_v58, 0.0  ;;  %1301 = vmatprep.mubr.f32.mxu0 %v856_v59  ;;  %v865_v0 = vmul.f32 %v1933_v57, %v2647_v5  ;;  %v860_v55 = vsel %vm859_vm12, %v2635_v60, %v858_v1 }
 0x163   :  { %v1935_v2 = vpop.eup %1934  ;;  %v576_v4 = vpop.f32.mrf.mxu1  ;;  %1302 = vmatmul.mubr.f32.gmra.mxu0 %v849_v63  ;;  %v863_v17 = vsel %vm861_vm14, %v862_v56, %v860_v55  ;;  %vm910_vm11 = vcmp.eq.f32.partialorder %v2719_v11, 0.0  ;;  %v911_v27 = vand.u32 2147483648, %v2719_v11  ;;  %vm915_vm12 = vcmp.eq.f32.partialorder %v2731_v7, inf }
 0x164   :  { %1948 = vrsqrt.f32 %v2743_v62  ;;  %v2755_v10 = vmax.f32 %v576_v4, 0.0  ;;  %v867_v50 = vsel %vm866_vm13, %v2647_v5, %v865_v0  ;;  %v872_v12 = vmul.f32 %v1935_v2, %v2659_v14 }
 0x165   :  { %v1937_v8 = vpop.eup %1936  ;;  %v578_v3 = vpop.f32.mrf.mxu1  ;;  %v870_v13 = vsel %vm868_vm15, %v869_v61, %v867_v50  ;;  %vm922_vm13 = vcmp.eq.f32.partialorder %v2743_v62, inf  ;;  %vm917_vm14 = vcmp.eq.f32.partialorder %v2731_v7, 0.0  ;;  %v918_v52 = vand.u32 2147483648, %v2731_v7 }
 0x166   :  { %1950 = vrsqrt.f32 %v2755_v10  ;;  %v2767_v20 = vmax.f32 %v578_v3, 0.0  ;;  %1306 = vmatprep.mubr.f32.mxu0 %v870_v13  ;;  %v879_v18 = vmul.f32 %v1937_v8, %v2671_v26  ;;  %v874_v5 = vsel %vm873_vm0, %v2659_v14, %v872_v12 }
 0x167   :  { %v1939_v22 = vpop.eup %1938  ;;  %v582_v25 = vpop.f32.mrf.mxu1  ;;  %1307 = vmatmul.mubr.f32.gmra.mxu0 %v863_v17  ;;  %v877_v39 = vsel %vm875_vm2, %v876_v9, %v874_v5  ;;  %vm924_vm15 = vcmp.eq.f32.partialorder %v2743_v62, 0.0  ;;  %v925_v41 = vand.u32 2147483648, %v2743_v62  ;;  %vm929_vm0 = vcmp.eq.f32.partialorder %v2755_v10, inf }
 0x168   :  { %1952 = vrsqrt.f32 %v2767_v20  ;;  %v2779_v31 = vmax.f32 %v582_v25, 0.0  ;;  %v881_v60 = vsel %vm880_vm1, %v2671_v26, %v879_v18  ;;  %v886_v29 = vmul.f32 %v1939_v22, %v2683_v36 }
 0x169   :  { %v1941_v32 = vpop.eup %1940  ;;  %v584_v23 = vpop.f32.mrf.mxu1  ;;  %v884_v34 = vsel %vm882_vm3, %v883_v16, %v881_v60  ;;  %vm936_vm1 = vcmp.eq.f32.partialorder %v2767_v20, inf  ;;  %vm931_vm2 = vcmp.eq.f32.partialorder %v2755_v10, 0.0  ;;  %v932_v63 = vand.u32 2147483648, %v2755_v10 }
 0x16a   :  { %1954 = vrsqrt.f32 %v2779_v31  ;;  %v2791_v38 = vmax.f32 %v584_v23, 0.0  ;;  %1311 = vmatprep.mubr.f32.mxu0 %v884_v34  ;;  %v893_v37 = vmul.f32 %v1941_v32, %v2695_v42  ;;  %v888_v26 = vsel %vm887_vm4, %v2683_v36, %v886_v29 }
 0x16b   :  { %v1943_v40 = vpop.eup %1942  ;;  %v588_v33 = vpop.f32.mrf.mxu1  ;;  %1312 = vmatmul.mubr.f32.gmra.mxu0 %v877_v39  ;;  %v891_v48 = vsel %vm889_vm6, %v890_v30, %v888_v26  ;;  %vm938_vm3 = vcmp.eq.f32.partialorder %v2767_v20, 0.0  ;;  %v939_v50 = vand.u32 2147483648, %v2767_v20  ;;  %vm943_vm4 = vcmp.eq.f32.partialorder %v2779_v31, inf }
 0x16c   :  { %1956 = vrsqrt.f32 %v2791_v38  ;;  %v2803_v28 = vmax.f32 %v588_v33, 0.0  ;;  %v895_v14 = vsel %vm894_vm5, %v2695_v42, %v893_v37  ;;  %v900_v44 = vmul.f32 %v1943_v40, %v2707_v47 }
 0x16d   :  { %v1945_v45 = vpop.eup %1944  ;;  %v590_v35 = vpop.f32.mrf.mxu1  ;;  %v898_v46 = vsel %vm896_vm7, %v897_v21, %v895_v14  ;;  %vm950_vm5 = vcmp.eq.f32.partialorder %v2791_v38, inf  ;;  %vm945_vm6 = vcmp.eq.f32.partialorder %v2779_v31, 0.0  ;;  %v946_v17 = vand.u32 2147483648, %v2779_v31 }
 0x16e   :  { %1958 = vrsqrt.f32 %v2803_v28  ;;  %v2815_v19 = vmax.f32 %v590_v35, 0.0  ;;  %1316 = vmatprep.mubr.f32.mxu0 %v898_v46  ;;  %v907_v49 = vmul.f32 %v1945_v45, %v2719_v11  ;;  %v902_v42 = vsel %vm901_vm8, %v2707_v47, %v900_v44 }
 0x16f   :  { %v1947_v15 = vpop.eup %1946  ;;  %v594_v51 = vpop.f32.mrf.mxu1  ;;  %1317 = vmatmul.mubr.f32.gmra.mxu0 %v891_v48  ;;  %v905_v57 = vsel %vm903_vm10, %v904_v43, %v902_v42  ;;  %vm952_vm7 = vcmp.eq.f32.partialorder %v2791_v38, 0.0  ;;  %v953_v60 = vand.u32 2147483648, %v2791_v38  ;;  %vm957_vm8 = vcmp.eq.f32.partialorder %v2803_v28, inf }
 0x170   :  { %1960 = vrsqrt.f32 %v2815_v19  ;;  %v2827_v53 = vmax.f32 %v594_v51, 0.0  ;;  %v909_v36 = vsel %vm908_vm9, %v2719_v11, %v907_v49  ;;  %v914_v6 = vmul.f32 %v1947_v15, %v2731_v7 }
 0x171   :  { %v1949_v54 = vpop.eup %1948  ;;  %v596_v24 = vpop.f32.mrf.mxu1  ;;  %v912_v56 = vsel %vm910_vm11, %v911_v27, %v909_v36  ;;  %vm964_vm9 = vcmp.eq.f32.partialorder %v2815_v19, inf  ;;  %vm959_vm10 = vcmp.eq.f32.partialorder %v2803_v28, 0.0  ;;  %v960_v39 = vand.u32 2147483648, %v2803_v28 }
 0x172   :  { %1962 = vrsqrt.f32 %v2827_v53  ;;  %v2839_v1 = vmax.f32 %v596_v24, 0.0  ;;  %1321 = vmatprep.mubr.f32.mxu0 %v912_v56  ;;  %v921_v58 = vmul.f32 %v1949_v54, %v2743_v62  ;;  %v916_v11 = vsel %vm915_vm12, %v2731_v7, %v914_v6 }
 0x173   :  { %v1951_v59 = vpop.eup %1950  ;;  %v600_v61 = vpop.f32.mrf.mxu1  ;;  %1322 = vmatmul.mubr.f32.gmra.mxu0 %v905_v57  ;;  %v919_v8 = vsel %vm917_vm14, %v918_v52, %v916_v11  ;;  %vm966_vm11 = vcmp.eq.f32.partialorder %v2815_v19, 0.0  ;;  %v967_v14 = vand.u32 2147483648, %v2815_v19  ;;  %vm971_vm12 = vcmp.eq.f32.partialorder %v2827_v53, inf }
 0x174   :  { %1964 = vrsqrt.f32 %v2839_v1  ;;  %v2851_v0 = vmax.f32 %v600_v61, 0.0  ;;  %v923_v47 = vsel %vm922_vm13, %v2743_v62, %v921_v58  ;;  %v928_v2 = vmul.f32 %v1951_v59, %v2755_v10 }
 0x175   :  { %v1953_v4 = vpop.eup %1952  ;;  %v602_v55 = vpop.f32.mrf.mxu1  ;;  %v926_v9 = vsel %vm924_vm15, %v925_v41, %v923_v47  ;;  %vm978_vm13 = vcmp.eq.f32.partialorder %v2839_v1, inf  ;;  %vm973_vm14 = vcmp.eq.f32.partialorder %v2827_v53, 0.0  ;;  %v974_v48 = vand.u32 2147483648, %v2827_v53 }
 0x176   :  { %1966 = vrsqrt.f32 %v2851_v0  ;;  %v2863_v12 = vmax.f32 %v602_v55, 0.0  ;;  %1326 = vmatprep.mubr.f32.mxu0 %v926_v9  ;;  %v935_v3 = vmul.f32 %v1953_v4, %v2767_v20  ;;  %v930_v62 = vsel %vm929_vm0, %v2755_v10, %v928_v2 }
 0x177   :  { %v1955_v13 = vpop.eup %1954  ;;  %v606_v16 = vpop.f32.mrf.mxu1  ;;  %1327 = vmatmul.mubr.f32.gmra.mxu0 %v919_v8  ;;  %v933_v32 = vsel %vm931_vm2, %v932_v63, %v930_v62  ;;  %vm980_vm15 = vcmp.eq.f32.partialorder %v2839_v1, 0.0  ;;  %v981_v36 = vand.u32 2147483648, %v2839_v1  ;;  %vm985_vm0 = vcmp.eq.f32.partialorder %v2851_v0, inf }
 0x178   :  { %1968 = vrsqrt.f32 %v2863_v12  ;;  %v2875_v18 = vmax.f32 %v606_v16, 0.0  ;;  %v937_v7 = vsel %vm936_vm1, %v2767_v20, %v935_v3  ;;  %v942_v22 = vmul.f32 %v1955_v13, %v2779_v31 }
 0x179   :  { %v1957_v25 = vpop.eup %1956  ;;  %v608_v5 = vpop.f32.mrf.mxu1  ;;  %v940_v30 = vsel %vm938_vm3, %v939_v50, %v937_v7  ;;  %vm992_vm1 = vcmp.eq.f32.partialorder %v2863_v12, inf  ;;  %vm987_vm2 = vcmp.eq.f32.partialorder %v2851_v0, 0.0  ;;  %v988_v58 = vand.u32 2147483648, %v2851_v0 }
 0x17a   :  { %1970 = vrsqrt.f32 %v2875_v18  ;;  %v2887_v29 = vmax.f32 %v608_v5, 0.0  ;;  %1331 = vmatprep.mubr.f32.mxu0 %v940_v30  ;;  %v949_v23 = vmul.f32 %v1957_v25, %v2791_v38  ;;  %v944_v20 = vsel %vm943_vm4, %v2779_v31, %v942_v22 }
 0x17b   :  { %v1959_v34 = vpop.eup %1958  ;;  %v612_v21 = vpop.f32.mrf.mxu1  ;;  %1332 = vmatmul.mubr.f32.gmra.mxu0 %v933_v32  ;;  %v947_v45 = vsel %vm945_vm6, %v946_v17, %v944_v20  ;;  %vm994_vm3 = vcmp.eq.f32.partialorder %v2863_v12, 0.0  ;;  %v995_v4 = vand.u32 2147483648, %v2863_v12  ;;  %vm999_vm4 = vcmp.eq.f32.partialorder %v2875_v18, inf }
 0x17c   :  { %1972 = vrsqrt.f32 %v2887_v29  ;;  %v2899_v37 = vmax.f32 %v612_v21, 0.0  ;;  %v951_v10 = vsel %vm950_vm5, %v2791_v38, %v949_v23  ;;  %v956_v40 = vmul.f32 %v1959_v34, %v2803_v28  ;;  %v2940_v56 = vpop.f32.mrf.mxu0 }
 0x17d   :  { %v1961_v33 = vpop.eup %1960  ;;  %v614_v26 = vpop.f32.mrf.mxu1  ;;  %v954_v43 = vsel %vm952_vm7, %v953_v60, %v951_v10  ;;  %vm1006_vm5 = vcmp.eq.f32.partialorder %v2887_v29, inf  ;;  %vm1001_vm6 = vcmp.eq.f32.partialorder %v2875_v18, 0.0  ;;  %v1002_v16 = vand.u32 2147483648, %v2875_v18 }
 0x17e   :  { %1974 = vrsqrt.f32 %v2899_v37  ;;  %v2911_v44 = vmax.f32 %v614_v26, 0.0  ;;  %1336 = vmatprep.mubr.f32.mxu0 %v954_v43  ;;  %v963_v35 = vmul.f32 %v1961_v33, %v2815_v19  ;;  %v958_v38 = vsel %vm957_vm8, %v2803_v28, %v956_v40  ;;  %v2955_v11 = vpop.f32.mrf.mxu0 }
 0x17f   :  { %v1963_v46 = vpop.eup %1962  ;;  %v618_v27 = vpop.f32.mrf.mxu1  ;;  %1337 = vmatmul.mubr.f32.gmra.mxu0 %v947_v45  ;;  %v961_v54 = vsel %vm959_vm10, %v960_v39, %v958_v38  ;;  %vm1008_vm7 = vcmp.eq.f32.partialorder %v2887_v29, 0.0  ;;  %v1009_v30 = vand.u32 2147483648, %v2887_v29  ;;  %vm1013_vm8 = vcmp.eq.f32.partialorder %v2899_v37, inf }
 0x180   :  { %1976 = vrsqrt.f32 %v2911_v44  ;;  %v2923_v49 = vmax.f32 %v618_v27, 0.0  ;;  %v965_v31 = vsel %vm964_vm9, %v2815_v19, %v963_v35  ;;  %v970_v15 = vmul.f32 %v1963_v46, %v2827_v53  ;;  %v2968_v8 = vpop.f32.mrf.mxu0 }
 0x181   :  { %v1965_v51 = vpop.eup %1964  ;;  %v620_v42 = vpop.f32.mrf.mxu1  ;;  %v968_v52 = vsel %vm966_vm11, %v967_v14, %v965_v31  ;;  %vm1020_vm9 = vcmp.eq.f32.partialorder %v2911_v44, inf  ;;  %vm1015_vm10 = vcmp.eq.f32.partialorder %v2899_v37, 0.0  ;;  %v1016_v39 = vand.u32 2147483648, %v2899_v37 }
 0x182   :  { %1978 = vrsqrt.f32 %v2923_v49  ;;  %v2935_v6 = vmax.f32 %v620_v42, 0.0  ;;  %1341 = vmatprep.mubr.f32.mxu0 %v968_v52  ;;  %v977_v24 = vmul.f32 %v1965_v51, %v2839_v1  ;;  %v972_v57 = vsel %vm971_vm12, %v2827_v53, %v970_v15  ;;  %v2983_v7 = vpop.f32.mrf.mxu0 }
 0x183   :  { %v1967_v19 = vpop.eup %1966  ;;  %v624_v41 = vpop.f32.mrf.mxu1  ;;  %1342 = vmatmul.mubr.f32.gmra.mxu0 %v961_v54  ;;  %v975_v9 = vsel %vm973_vm14, %v974_v48, %v972_v57  ;;  %vm1022_vm11 = vcmp.eq.f32.partialorder %v2911_v44, 0.0  ;;  %v1023_v45 = vand.u32 2147483648, %v2911_v44  ;;  %vm1027_vm12 = vcmp.eq.f32.partialorder %v2923_v49, inf }
 0x184   :  { %1980 = vrsqrt.f32 %v2935_v6  ;;  %v2949_v28 = vmax.f32 %v624_v41, 0.0  ;;  %v979_v59 = vsel %vm978_vm13, %v2839_v1, %v977_v24  ;;  %v984_v61 = vmul.f32 %v1967_v19, %v2851_v0  ;;  %v2996_v34 = vpop.f32.mrf.mxu0 }
 0x185   :  { %v1969_v63 = vpop.eup %1968  ;;  %v626_v47 = vpop.f32.mrf.mxu1  ;;  %v982_v2 = vsel %vm980_vm15, %v981_v36, %v979_v59  ;;  %vm1034_vm13 = vcmp.eq.f32.partialorder %v2935_v6, inf  ;;  %vm1029_vm14 = vcmp.eq.f32.partialorder %v2923_v49, 0.0  ;;  %v1030_v15 = vand.u32 2147483648, %v2923_v49 }
 0x186   :  { %1982 = vrsqrt.f32 %v2949_v28  ;;  %v2963_v55 = vmax.f32 %v626_v47, 0.0  ;;  %1346 = vmatprep.mubr.f32.mxu0 %v982_v2  ;;  %v991_v50 = vmul.f32 %v1969_v63, %v2863_v12  ;;  %v986_v13 = vsel %vm985_vm0, %v2851_v0, %v984_v61  ;;  %v3011_v33 = vpop.f32.mrf.mxu0 }
 0x187   :  { %v1971_v1 = vpop.eup %1970  ;;  %v630_v3 = vpop.f32.mrf.mxu1  ;;  %1347 = vmatmul.mubr.f32.gmra.mxu0 %v975_v9  ;;  %v989_v32 = vsel %vm987_vm2, %v988_v58, %v986_v13  ;;  %vm1036_vm15 = vcmp.eq.f32.partialorder %v2935_v6, 0.0  ;;  %v1037_v19 = vand.u32 2147483648, %v2935_v6  ;;  %vm1041_vm0 = vcmp.eq.f32.partialorder %v2949_v28, inf }
 0x188   :  { %1984 = vrsqrt.f32 %v2963_v55  ;;  %v2977_v53 = vmax.f32 %v630_v3, 0.0  ;;  %v993_v62 = vsel %vm992_vm1, %v2863_v12, %v991_v50  ;;  %v998_v17 = vmul.f32 %v1971_v1, %v2875_v18 }
 0x189   :  { %v1973_v22 = vpop.eup %1972  ;;  %v632_v25 = vpop.f32.mrf.mxu1  ;;  %v996_v5 = vsel %vm994_vm3, %v995_v4, %v993_v62  ;;  %vm1048_vm1 = vcmp.eq.f32.partialorder %v2963_v55, inf  ;;  %vm1043_vm2 = vcmp.eq.f32.partialorder %v2949_v28, 0.0  ;;  %v1044_v47 = vand.u32 2147483648, %v2949_v28 }
 0x18a   :  { %1986 = vrsqrt.f32 %v2977_v53  ;;  %v2991_v60 = vmax.f32 %v632_v25, 0.0  ;;  %1351 = vmatprep.mubr.f32.mxu0 %v996_v5  ;;  %v1005_v23 = vmul.f32 %v1973_v22, %v2887_v29  ;;  %v1000_v20 = vsel %vm999_vm4, %v2875_v18, %v998_v17  ;;  %v3024_v38 = vpop.f32.mrf.mxu0 }
 0x18b   :  { %v1975_v12 = vpop.eup %1974  ;;  %v636_v21 = vpop.f32.mrf.mxu1  ;;  %1352 = vmatmul.mubr.f32.gmra.mxu0 %v989_v32  ;;  %v1003_v46 = vsel %vm1001_vm6, %v1002_v16, %v1000_v20  ;;  %vm1050_vm3 = vcmp.eq.f32.partialorder %v2963_v55, 0.0  ;;  %v1051_v13 = vand.u32 2147483648, %v2963_v55  ;;  %vm1055_vm4 = vcmp.eq.f32.partialorder %v2977_v53, inf }
 0x18c   :  { %1988 = vrsqrt.f32 %v2991_v60  ;;  %v3005_v0 = vmax.f32 %v636_v21, 0.0  ;;  %v1007_v10 = vsel %vm1006_vm5, %v2887_v29, %v1005_v23  ;;  %v1012_v40 = vmul.f32 %v1975_v12, %v2899_v37  ;;  %v3039_v52 = vpop.f32.mrf.mxu0 }
 0x18d   :  { %v1977_v26 = vpop.eup %1976  ;;  %v638_v43 = vpop.f32.mrf.mxu1  ;;  %v1010_v14 = vsel %vm1008_vm7, %v1009_v30, %v1007_v10  ;;  %vm1062_vm5 = vcmp.eq.f32.partialorder %v2991_v60, inf  ;;  %vm1057_vm6 = vcmp.eq.f32.partialorder %v2977_v53, 0.0  ;;  %v1058_v30 = vand.u32 2147483648, %v2977_v53 }
 0x18e   :  { %1990 = vrsqrt.f32 %v3005_v0  ;;  %v3019_v35 = vmax.f32 %v638_v43, 0.0  ;;  %1356 = vmatprep.mubr.f32.mxu0 %v1010_v14  ;;  %v1019_v27 = vmul.f32 %v1977_v26, %v2911_v44  ;;  %v1014_v31 = vsel %vm1013_vm8, %v2899_v37, %v1012_v40  ;;  %v3052_v59 = vpop.f32.mrf.mxu0 }
 0x18f   :  { %v1979_v29 = vpop.eup %1978  ;;  %v642_v48 = vpop.f32.mrf.mxu1  ;;  %1357 = vmatmul.mubr.f32.gmra.mxu0 %v1003_v46  ;;  %v1017_v57 = vsel %vm1015_vm10, %v1016_v39, %v1014_v31  ;;  %vm1064_vm7 = vcmp.eq.f32.partialorder %v2991_v60, 0.0  ;;  %v1065_v10 = vand.u32 2147483648, %v2991_v60  ;;  %vm1069_vm8 = vcmp.eq.f32.partialorder %v3005_v0, inf }
 0x190   :  { %1992 = vrsqrt.f32 %v3019_v35  ;;  %v3033_v18 = vmax.f32 %v642_v48, 0.0  ;;  %v1021_v51 = vsel %vm1020_vm9, %v2911_v44, %v1019_v27  ;;  %v1026_v42 = vmul.f32 %v1979_v29, %v2923_v49  ;;  %v3067_v9 = vpop.f32.mrf.mxu0 }
 0x191   :  { %v1981_v36 = vpop.eup %1980  ;;  %v644_v54 = vpop.f32.mrf.mxu1  ;;  %v1024_v24 = vsel %vm1022_vm11, %v1023_v45, %v1021_v51  ;;  %vm1076_vm9 = vcmp.eq.f32.partialorder %v3019_v35, inf  ;;  %vm1071_vm10 = vcmp.eq.f32.partialorder %v3005_v0, 0.0  ;;  %v1072_v27 = vand.u32 2147483648, %v3005_v0 }
 0x192   :  { %1994 = vrsqrt.f32 %v3033_v18  ;;  %v3047_v41 = vmax.f32 %v644_v54, 0.0  ;;  %1361 = vmatprep.mubr.f32.mxu0 %v1024_v24  ;;  %v1033_v58 = vmul.f32 %v1981_v36, %v2935_v6  ;;  %v1028_v63 = vsel %vm1027_vm12, %v2923_v49, %v1026_v42  ;;  %v3080_v22 = vpop.f32.mrf.mxu0 }
 0x193   :  { %v1983_v44 = vpop.eup %1982  ;;  %v648_v61 = vpop.f32.mrf.mxu1  ;;  %1362 = vmatmul.mubr.f32.gmra.mxu0 %v1017_v57  ;;  %v1031_v62 = vsel %vm1029_vm14, %v1030_v15, %v1028_v63  ;;  %vm1078_vm11 = vcmp.eq.f32.partialorder %v3019_v35, 0.0  ;;  %v1079_v36 = vand.u32 2147483648, %v3019_v35  ;;  %vm1083_vm12 = vcmp.eq.f32.partialorder %v3033_v18, inf }
 0x194   :  { %1996 = vrsqrt.f32 %v3047_v41  ;;  %v3061_v37 = vmax.f32 %v648_v61, 0.0  ;;  %v1035_v2 = vsel %vm1034_vm13, %v2935_v6, %v1033_v58  ;;  %v1040_v4 = vmul.f32 %v1983_v44, %v2949_v28  ;;  %v3095_v12 = vpop.f32.mrf.mxu0 }
 0x195   :  { %v1985_v50 = vpop.eup %1984  ;;  %v650_v1 = vpop.f32.mrf.mxu1  ;;  %v1038_v3 = vsel %vm1036_vm15, %v1037_v19, %v1035_v2  ;;  %vm1090_vm13 = vcmp.eq.f32.partialorder %v3047_v41, inf  ;;  %vm1085_vm14 = vcmp.eq.f32.partialorder %v3033_v18, 0.0  ;;  %v1086_v61 = vand.u32 2147483648, %v3033_v18 }
 0x196   :  { %1998 = vrsqrt.f32 %v3061_v37  ;;  %v3075_v16 = vmax.f32 %v650_v1, 0.0  ;;  %1366 = vmatprep.mubr.f32.mxu0 %v1038_v3  ;;  %v1047_v17 = vmul.f32 %v1985_v50, %v2963_v55  ;;  %v1042_v5 = vsel %vm1041_vm0, %v2949_v28, %v1040_v4  ;;  %v3108_v14 = vpop.f32.mrf.mxu0 }
 0x197   :  { %v1987_v6 = vpop.eup %1986  ;;  %v654_v25 = vpop.f32.mrf.mxu1  ;;  %1367 = vmatmul.mubr.f32.gmra.mxu0 %v1031_v62  ;;  %v1045_v26 = vsel %vm1043_vm2, %v1044_v47, %v1042_v5  ;;  %vm1092_vm15 = vcmp.eq.f32.partialorder %v3047_v41, 0.0  ;;  %v1093_v3 = vand.u32 2147483648, %v3047_v41  ;;  %vm1097_vm0 = vcmp.eq.f32.partialorder %v3061_v37, inf }
 0x198   :  { %2000 = vrsqrt.f32 %v3075_v16  ;;  %v3089_v49 = vmax.f32 %v654_v25, 0.0  ;;  %v1049_v32 = vsel %vm1048_vm1, %v2963_v55, %v1047_v17  ;;  %v1054_v23 = vmul.f32 %v1987_v6, %v2977_v53  ;;  %v3123_v31 = vpop.f32.mrf.mxu0 }
 0x199   :  { %v1989_v21 = vpop.eup %1988  ;;  %v656_v20 = vpop.f32.mrf.mxu1  ;;  %v1052_v39 = vsel %vm1050_vm3, %v1051_v13, %v1049_v32  ;;  %vm1104_vm1 = vcmp.eq.f32.partialorder %v3075_v16, inf  ;;  %vm1099_vm2 = vcmp.eq.f32.partialorder %v3061_v37, 0.0  ;;  %vm1106_vm3 = vcmp.eq.f32.partialorder %v3075_v16, 0.0 }
 0x19a   :  { %2002 = vrsqrt.f32 %v3089_v49  ;;  %v3103_v40 = vmax.f32 %v656_v20, 0.0  ;;  %1371 = vmatprep.mubr.f32.mxu0 %v1052_v39  ;;  %v1061_v43 = vmul.f32 %v1989_v21, %v2991_v60  ;;  %v1056_v46 = vsel %vm1055_vm4, %v2977_v53, %v1054_v23  ;;  %v3136_v57 = vpop.f32.mrf.mxu0 }
 0x19b   :  { %v1991_v55 = vpop.eup %1990  ;;  %v660_v45 = vpop.f32.mrf.mxu1  ;;  %1372 = vmatmul.mubr.f32.gmra.mxu0 %v1045_v26  ;;  %v1059_v24 = vsel %vm1057_vm6, %v1058_v30, %v1056_v46  ;;  %v1100_v30 = vand.u32 2147483648, %v3061_v37  ;;  %v1107_v26 = vand.u32 2147483648, %v3075_v16  ;;  %vm1111_vm4 = vcmp.eq.f32.partialorder %v3089_v49, inf }
 0x19c   :  { %2004 = vrsqrt.f32 %v3103_v40  ;;  %v3117_v28 = vmax.f32 %v660_v45, 0.0  ;;  %v1063_v29 = vsel %vm1062_vm5, %v2991_v60, %v1061_v43  ;;  %v1068_v48 = vmul.f32 %v1991_v55, %v3005_v0  ;;  %v3151_v2 = vpop.f32.mrf.mxu0 }
 0x19d   :  { %v1993_v15 = vpop.eup %1992  ;;  %v662_v51 = vpop.f32.mrf.mxu1  ;;  %v1066_v42 = vsel %vm1064_vm7, %v1065_v10, %v1063_v29  ;;  %vm1118_vm5 = vcmp.eq.f32.partialorder %v3103_v40, inf  ;;  %vm1113_vm6 = vcmp.eq.f32.partialorder %v3089_v49, 0.0  ;;  %vm1120_vm7 = vcmp.eq.f32.partialorder %v3103_v40, 0.0 }
 0x19e   :  { %2006 = vrsqrt.f32 %v3117_v28  ;;  %v3131_v54 = vmax.f32 %v662_v51, 0.0  ;;  %1376 = vmatprep.mubr.f32.mxu0 %v1066_v42  ;;  %v1075_v19 = vmul.f32 %v1993_v15, %v3019_v35  ;;  %v1070_v44 = vsel %vm1069_vm8, %v3005_v0, %v1068_v48  ;;  %v3164_v6 = vpop.f32.mrf.mxu0 }
 0x19f   :  { %v1995_v60 = vpop.eup %1994  ;;  %v666_v58 = vpop.f32.mrf.mxu1  ;;  %1377 = vmatmul.mubr.f32.gmra.mxu0 %v1059_v24  ;;  %v1073_v62 = vsel %vm1071_vm10, %v1072_v27, %v1070_v44  ;;  %v1114_v48 = vand.u32 2147483648, %v3089_v49  ;;  %vm1125_vm8 = vcmp.eq.f32.partialorder %v3117_v28, inf  ;;  %vm1127_vm10 = vcmp.eq.f32.partialorder %v3117_v28, 0.0 }
 0x1a0   :  { %2008 = vrsqrt.f32 %v3131_v54  ;;  %v3145_v53 = vmax.f32 %v666_v58, 0.0  ;;  %v1077_v63 = vsel %vm1076_vm9, %v3019_v35, %v1075_v19  ;;  %v1082_v47 = vmul.f32 %v1995_v60, %v3033_v18  ;;  %v3179_v21 = vpop.f32.mrf.mxu0 }
 0x1a1   :  { %v1997_v4 = vpop.eup %1996  ;;  %v668_v50 = vpop.f32.mrf.mxu1  ;;  %v1080_v1 = vsel %vm1078_vm11, %v1079_v36, %v1077_v63  ;;  %v1121_v60 = vand.u32 2147483648, %v3103_v40  ;;  %vm1132_vm9 = vcmp.eq.f32.partialorder %v3131_v54, inf  ;;  %vm1134_vm11 = vcmp.eq.f32.partialorder %v3131_v54, 0.0 }
 0x1a2   :  { %2010 = vrsqrt.f32 %v3145_v53  ;;  %v3159_v13 = vmax.f32 %v668_v50, 0.0  ;;  %1381 = vmatprep.mubr.f32.mxu0 %v1080_v1  ;;  %v1089_v17 = vmul.f32 %v1997_v4, %v3047_v41  ;;  %v1084_v5 = vsel %vm1083_vm12, %v3033_v18, %v1082_v47  ;;  %v3192_v46 = vpop.f32.mrf.mxu0 }
 0x1a3   :  { %v1999_v35 = vpop.eup %1998  ;;  %v672_v25 = vpop.f32.mrf.mxu1  ;;  %1382 = vmatmul.mubr.f32.gmra.mxu0 %v1073_v62  ;;  %v1087_v55 = vsel %vm1085_vm14, %v1086_v61, %v1084_v5  ;;  %v1128_v50 = vand.u32 2147483648, %v3117_v28  ;;  %v1135_v5 = vand.u32 2147483648, %v3131_v54  ;;  %vm1139_vm12 = vcmp.eq.f32.partialorder %v3145_v53, inf }
 0x1a4   :  { %2012 = vrsqrt.f32 %v3159_v13  ;;  %v3173_v0 = vmax.f32 %v672_v25, 0.0  ;;  %v1091_v32 = vsel %vm1090_vm13, %v3047_v41, %v1089_v17  ;;  %v1096_v23 = vmul.f32 %v1999_v35, %v3061_v37  ;;  %v3207_v42 = vpop.f32.mrf.mxu0 }
 0x1a5   :  { %v2001_v20 = vpop.eup %2000  ;;  %v674_v39 = vpop.f32.mrf.mxu1  ;;  %v1094_v10 = vsel %vm1092_vm15, %v1093_v3, %v1091_v32  ;;  %vm1146_vm13 = vcmp.eq.f32.partialorder %v3159_v13, inf  ;;  %vm1141_vm14 = vcmp.eq.f32.partialorder %v3145_v53, 0.0  ;;  %vm1148_vm15 = vcmp.eq.f32.partialorder %v3159_v13, 0.0 }
 0x1a6   :  { %2014 = vrsqrt.f32 %v3173_v0  ;;  %v3187_v43 = vmax.f32 %v674_v39, 0.0  ;;  %1386 = vmatprep.mubr.f32.mxu0 %v1094_v10  ;;  %v1103_v45 = vmul.f32 %v2001_v20, %v3075_v16  ;;  %v1098_v29 = vsel %vm1097_vm0, %v3061_v37, %v1096_v23  ;;  %v3220_v63 = vpop.f32.mrf.mxu0 }
 0x1a7   :  { %v2003_v41 = vpop.eup %2002  ;;  %v678_v27 = vpop.f32.mrf.mxu1  ;;  %1387 = vmatmul.mubr.f32.gmra.mxu0 %v1087_v55  ;;  %v1101_v44 = vsel %vm1099_vm2, %v1100_v30, %v1098_v29  ;;  %vm1153_vm0 = vcmp.eq.f32.partialorder %v3173_v0, inf  ;;  %vm1155_vm2 = vcmp.eq.f32.partialorder %v3173_v0, 0.0 }
 0x1a8   :  { %2016 = vrsqrt.f32 %v3187_v43  ;;  %v3201_v18 = vmax.f32 %v678_v27, 0.0  ;;  %v1105_v15 = vsel %vm1104_vm1, %v3075_v16, %v1103_v45  ;;  %v1110_v51 = vmul.f32 %v2003_v41, %v3089_v49  ;;  %v3235_v62 = vpop.f32.mrf.mxu0 }
 0x1a9   :  { %v2005_v36 = vpop.eup %2004  ;;  %v680_v24 = vpop.f32.mrf.mxu1  ;;  %v1108_v19 = vsel %vm1106_vm3, %v1107_v26, %v1105_v15  ;;  %v1142_v26 = vand.u32 2147483648, %v3145_v53  ;;  %v1149_v15 = vand.u32 2147483648, %v3159_v13  ;;  %vm1160_vm1 = vcmp.eq.f32.partialorder %v3187_v43, inf }
 0x1aa   :  { %2018 = vrsqrt.f32 %v3201_v18  ;;  %v3215_v58 = vmax.f32 %v680_v24, 0.0  ;;  %1391 = vmatprep.mubr.f32.mxu0 %v1108_v19  ;;  %v1117_v61 = vmul.f32 %v2005_v36, %v3103_v40  ;;  %v1112_v4 = vsel %vm1111_vm4, %v3089_v49, %v1110_v51  ;;  %v3248_v20 = vpop.f32.mrf.mxu0 }
 0x1ab   :  { %v2007_v16 = vpop.eup %2006  ;;  %v684_v47 = vpop.f32.mrf.mxu1  ;;  %1392 = vmatmul.mubr.f32.gmra.mxu0 %v1101_v44  ;;  %v1115_v32 = vsel %vm1113_vm6, %v1114_v48, %v1112_v4  ;;  %v1156_v44 = vand.u32 2147483648, %v3173_v0  ;;  %vm1162_vm3 = vcmp.eq.f32.partialorder %v3187_v43, 0.0  ;;  %vm1167_vm4 = vcmp.eq.f32.partialorder %v3201_v18, inf }
 0x1ac   :  { %2020 = vrsqrt.f32 %v3215_v58  ;;  %v3229_v37 = vmax.f32 %v684_v47, 0.0  ;;  %v1119_v1 = vsel %vm1118_vm5, %v3103_v40, %v1117_v61  ;;  %v1124_v3 = vmul.f32 %v2007_v16, %v3117_v28  ;;  %v1607_v41 = vpop.f32.mrf.mxu0 }
 0x1ad   :  { %v2009_v17 = vpop.eup %2008  ;;  %v686_v35 = vpop.f32.mrf.mxu1  ;;  %v1122_v25 = vsel %vm1120_vm7, %v1121_v60, %v1119_v1  ;;  %v1575_v1 = vadd.f32 %v2955_v11, %v2940_v56  ;;  %v1584_v56 = vadd.f32 %v3039_v52, %v3024_v38  ;;  %v1587_v11 = vadd.f32 %v3067_v9, %v3052_v59 }
 0x1ae   :  { %2022 = vrsqrt.f32 %v3229_v37  ;;  %v3243_v30 = vmax.f32 %v686_v35, 0.0  ;;  %1396 = vmatprep.mubr.f32.mxu0 %v1122_v25  ;;  %v1131_v23 = vmul.f32 %v2009_v17, %v3131_v54  ;;  %v1126_v10 = vsel %vm1125_vm8, %v3117_v28, %v1124_v3  ;;  %v1609_v19 = vpop.f32.mrf.mxu0 }
 0x1af   :  { %v2011_v40 = vpop.eup %2010  ;;  %v690_v39 = vpop.f32.mrf.mxu1  ;;  %1397 = vmatmul.mubr.f32.gmra.mxu0 %v1115_v32  ;;  %v1129_v36 = vsel %vm1127_vm10, %v1128_v50, %v1126_v10  ;;  %v1163_v50 = vand.u32 2147483648, %v3187_v43  ;;  %v1578_v35 = vadd.f32 %v2983_v7, %v2968_v8  ;;  %354 = vst [vmem:[#allocation11] sm:$0xff] %v1575_v1  ;;  %v1590_v8 = vadd.f32 %v3095_v12, %v3080_v22 }
 0x1b0   :  { %2024 = vrsqrt.f32 %v3243_v30  ;;  %v3257_v49 = vmax.f32 %v690_v39, 0.0  ;;  %v1133_v55 = vsel %vm1132_vm9, %v3131_v54, %v1131_v23  ;;  %v1138_v45 = vmul.f32 %v2011_v40, %v3145_v53  ;;  %v1610_v16 = vpop.f32.mrf.mxu0  ;;  %357 = vst [vmem:[#allocation11 + $0x18] sm:$0xff] %v1584_v56  ;;  %358 = vst [vmem:[#allocation11 + $0x20] sm:$0xff] %v1587_v11 }
 0x1b1   :  { %v2013_v27 = vpop.eup %2012  ;;  %v692_v29 = vpop.f32.mrf.mxu1  ;;  %v1136_v48 = vsel %vm1134_vm11, %v1135_v5, %v1133_v55  ;;  %355 = vst [vmem:[#allocation11 + $0x8] sm:$0xff] %v1578_v35  ;;  %v1596_v38 = vadd.f32 %v3151_v2, %v3136_v57  ;;  %359 = vst [vmem:[#allocation11 + $0x28] sm:$0xff] %v1590_v8  ;;  %v1599_v9 = vadd.f32 %v3179_v21, %v3164_v6  ;;  %vm1174_vm5 = vcmp.eq.f32.partialorder %v3215_v58, inf }
 0x1b2   :  { %2026 = vrsqrt.f32 %v3257_v49  ;;  %v3269_v51 = vmax.f32 %v692_v29, 0.0  ;;  %1401 = vmatprep.mubr.f32.mxu0 %v1136_v48  ;;  %v1145_v24 = vmul.f32 %v2013_v27, %v3159_v13  ;;  %v1140_v54 = vsel %vm1139_vm12, %v3145_v53, %v1138_v45  ;;  %v1612_v25 = vpop.f32.mrf.mxu0 }
 0x1b3   :  { %v2015_v60 = vpop.eup %2014  ;;  %1402 = vmatmul.mubr.f32.gmra.mxu0 %v1129_v36  ;;  %v1143_v3 = vsel %vm1141_vm14, %v1142_v26, %v1140_v54  ;;  %v1602_v22 = vadd.f32 %v3207_v42, %v3192_v46  ;;  %v1605_v12 = vadd.f32 %v3235_v62, %v3220_v63  ;;  %361 = vst [vmem:[#allocation11 + $0x38] sm:$0xff] %v1596_v38  ;;  %v1177_v6 = vand.u32 2147483648, %v3215_v58 }
 0x1b4   :  { %2028 = vrsqrt.f32 %v3269_v51  ;;  %v1147_v28 = vsel %vm1146_vm13, %v3159_v13, %v1145_v24  ;;  %v1152_v61 = vmul.f32 %v2015_v60, %v3173_v0  ;;  %v1581_v13 = vadd.f32 %v3011_v33, %v2996_v34  ;;  %v1613_v52 = vpop.f32.mrf.mxu0  ;;  %362 = vst [vmem:[#allocation11 + $0x40] sm:$0xff] %v1599_v9 }
 0x1b5   :  { %v2017_v47 = vpop.eup %2016  ;;  %v1150_v4 = vsel %vm1148_vm15, %v1149_v15, %v1147_v28  ;;  %v1593_v33 = vadd.f32 %v3123_v31, %v3108_v14  ;;  %v1608_v57 = vadd.f32 %v1607_v41, %v3248_v20  ;;  %v1611_v2 = vadd.f32 %v1610_v16, %v1609_v19  ;;  %363 = vst [vmem:[#allocation11 + $0x48] sm:$0xff] %v1602_v22 }
 0x1b6   :  { %1406 = vmatprep.mubr.f32.mxu0 %v1150_v4  ;;  %v1159_v17 = vmul.f32 %v2017_v47, %v3187_v43  ;;  %v1154_v32 = vsel %vm1153_vm0, %v3173_v0, %v1152_v61  ;;  %356 = vst [vmem:[#allocation11 + $0x10] sm:$0xff] %v1581_v13  ;;  %364 = vst [vmem:[#allocation11 + $0x50] sm:$0xff] %v1605_v12  ;;  %v1614_v0 = vadd.f32 %v1613_v52, %v1612_v25 }
 0x1b7   :  { %v2019_v5 = vpop.eup %2018  ;;  %1407 = vmatmul.mubr.f32.gmra.mxu0 %v1143_v3  ;;  %v1157_v14 = vsel %vm1155_vm2, %v1156_v44, %v1154_v32  ;;  %360 = vst [vmem:[#allocation11 + $0x30] sm:$0xff] %v1593_v33  ;;  %vm1176_vm6 = vcmp.eq.f32.partialorder %v3215_v58, 0.0  ;;  %v1170_v42 = vand.u32 2147483648, %v3201_v18  ;;  %365 = vst [vmem:[#allocation11 + $0x58] sm:$0xff] %v1608_v57  ;;  %vm1169_vm7 = vcmp.eq.f32.partialorder %v3201_v18, 0.0 }
 0x1b8   :  { %v1161_v7 = vsel %vm1160_vm1, %v3187_v43, %v1159_v17  ;;  %v1166_v34 = vmul.f32 %v2019_v5, %v3201_v18  ;;  %v1615_v43 = vpop.f32.mrf.mxu0  ;;  %366 = vst [vmem:[#allocation11 + $0x60] sm:$0xff] %v1611_v2  ;;  %367 = vst [vmem:[#allocation11 + $0x68] sm:$0xff] %v1614_v0  ;;  %vm1181_vm8 = vcmp.eq.f32.partialorder %v3229_v37, inf  ;;  %vm1188_vm9 = vcmp.eq.f32.partialorder %v3243_v30, inf }
 0x1b9   :  { %v2021_v53 = vpop.eup %2020  ;;  %v1164_v59 = vsel %vm1162_vm3, %v1163_v50, %v1161_v7  ;;  %v1191_v45 = vand.u32 2147483648, %v3243_v30  ;;  %vm1190_vm10 = vcmp.eq.f32.partialorder %v3243_v30, 0.0  ;;  %v1184_v27 = vand.u32 2147483648, %v3229_v37 }
 0x1ba   :  { %1411 = vmatprep.mubr.f32.mxu1 %v1164_v59  ;;  %v1173_v31 = vmul.f32 %v2021_v53, %v3215_v58  ;;  %v1168_v21 = vsel %vm1167_vm4, %v3201_v18, %v1166_v34  ;;  %v1616_v62 = vpop.f32.mrf.mxu0  ;;  %vm1183_vm11 = vcmp.eq.f32.partialorder %v3229_v37, 0.0  ;;  %vm1195_vm12 = vcmp.eq.f32.partialorder %v3257_v49, inf }
 0x1bb   :  { %v2023_v23 = vpop.eup %2022  ;;  %1412 = vmatmul.mubr.f32.vlgmr.msra.gmra.mxu1 %v1157_v14  ;;  %v1617_v39 = vadd.f32 %v1616_v62, %v1615_v43  ;;  %v1171_v10 = vsel %vm1169_vm7, %v1170_v42, %v1168_v21  ;;  %vm1202_vm13 = vcmp.eq.f32.partialorder %v3269_v51, inf  ;;  %vm1204_vm14 = vcmp.eq.f32.partialorder %v3269_v51, 0.0 }
 0x1bc   :  { %v1175_v46 = vsel %vm1174_vm5, %v3215_v58, %v1173_v31  ;;  %v1180_v63 = vmul.f32 %v2023_v23, %v3229_v37  ;;  %v1618_v58 = vpop.f32.mrf.mxu0  ;;  %vm1197_vm15 = vcmp.eq.f32.partialorder %v3257_v49, 0.0 }
 0x1bd   :  { %v2025_v20 = vpop.eup %2024  ;;  %v1178_v40 = vsel %vm1176_vm6, %v1177_v6, %v1175_v46  ;;  %368 = vst [vmem:[#allocation11 + $0x70] sm:$0xff] %v1617_v39 }
 0x1be   :  { %1416 = vmatprep.mubr.f32.mxu1 %v1178_v40  ;;  %v1187_v26 = vmul.f32 %v2025_v20, %v3243_v30  ;;  %v1182_v41 = vsel %vm1181_vm8, %v3229_v37, %v1180_v63  ;;  %v1619_v48 = vpop.f32.mrf.mxu0  ;;  %v1198_v37 = vand.u32 2147483648, %v3257_v49 }
 0x1bf   :  { %v2027_v55 = vpop.eup %2026  ;;  %1417 = vmatmul.mubr.f32.gmra.mxu1 %v1171_v10  ;;  %v1620_v24 = vadd.f32 %v1619_v48, %v1618_v58  ;;  %v1185_v19 = vsel %vm1183_vm11, %v1184_v27, %v1182_v41 }
 0x1c0   :  { %v1189_v18 = vsel %vm1188_vm9, %v3243_v30, %v1187_v26  ;;  %v1194_v29 = vmul.f32 %v2027_v55, %v3257_v49  ;;  %v1205_v30 = vand.u32 2147483648, %v3269_v51 }
 0x1c1   :  { %v2029_v15 = vpop.eup %2028  ;;  %v1192_v36 = vsel %vm1190_vm10, %v1191_v45, %v1189_v18  ;;  %369 = vst [vmem:[#allocation11 + $0x78] sm:$0xff] %v1620_v24 }
 0x1c2   :  { %1421 = vmatprep.mubr.f32.mxu1 %v1192_v36  ;;  %v1201_v60 = vmul.f32 %v2029_v15, %v3269_v51  ;;  %v1196_v54 = vsel %vm1195_vm12, %v3257_v49, %v1194_v29 }
 0x1c3   :  { %1422 = vmatmul.mubr.f32.gmra.mxu1 %v1185_v19  ;;  %v1199_v61 = vsel %vm1197_vm15, %v1198_v37, %v1196_v54 }
 0x1c4   :  { %v1203_v44 = vsel %vm1202_vm13, %v3269_v51, %v1201_v60 }
 0x1c5   :  { %v1206_v28 = vsel %vm1204_vm14, %v1205_v30, %v1203_v44 }
 0x1c6   :  { %1426 = vmatprep.mubr.f32.mxu1 %v1206_v28 }
 0x1c7   :  { %1427 = vmatmul.mubr.f32.gmra.mxu1 %v1199_v61 }
 0x20b   :  { %v1273_v16 = vpop.f32.mrf.mxu0 }
 0x20d   :  { %v1275_v47 = vpop.f32.mrf.mxu0 }
 0x20f   :  { %v1278_v4 = vpop.f32.mrf.mxu0 }
 0x211   :  { %v1280_v50 = vpop.f32.mrf.mxu0 }
 0x213   :  { %v1283_v1 = vpop.f32.mrf.mxu0 }
 0x215   :  { %v1285_v3 = vpop.f32.mrf.mxu0 }
 0x217   :  { %v1288_v17 = vpop.f32.mrf.mxu0 }
 0x219   :  { %v1290_v35 = vpop.f32.mrf.mxu0 }
 0x21b   :  { %v1293_v13 = vpop.f32.mrf.mxu0 }
 0x21c   :  { %2153 = shalt.err (!%p2150_p10)
}
 0x21d   :  { %1529 = dma.vmem_to_hbm [thread:$0]  %s1524_s3, 2048, %s3371_s5, [#allocation12], %s2194_s23, %s2194_s23, %s2195_s24   ;;  %v1295_v49 = vpop.f32.mrf.mxu0  ;;  %v2030_v23 = vld [vmem:[#allocation7 + $0x8] sm:$0xff]  ;;  %v2031_v0 = vld [vmem:[#allocation7] sm:$0xff]  ;;  %v2032_v42 = vld [vmem:[#allocation7 + $0x10] sm:$0xff] }
 0x21e   :  { %v1433_v6 = vmul.f32 %v2030_v23, %v1278_v4  ;;  %v1432_v46 = vmul.f32 %v2031_v0, %v1273_v16  ;;  %v1434_v63 = vmul.f32 %v2032_v42, %v1283_v1  ;;  %v2033_v40 = vld [vmem:[#allocation7 + $0x18] sm:$0xff]  ;;  %v2034_v58 = vld [vmem:[#allocation7 + $0x20] sm:$0xff]  ;;  %v2035_v18 = vld [vmem:[#allocation7 + $0x28] sm:$0xff]  ;;  %s2200_s5 = smov [#allocation10]  }
 0x21f   :  { %v1298_v51 = vpop.f32.mrf.mxu0  ;;  %v1435_v39 = vmul.f32 %v2033_v40, %v1288_v17  ;;  %v1436_v55 = vmul.f32 %v2034_v58, %v1293_v13  ;;  %v2036_v15 = vld [vmem:[#allocation7 + $0x30] sm:$0xff]  ;;  %v2037_v60 = vld [vmem:[#allocation7 + $0x38] sm:$0xff]  ;;  %v2038_v37 = vld [vmem:[#allocation7 + $0x40] sm:$0xff]  ;;  %s1514_s16 = sshll.u32 %s2200_s5, 4  ;;  %s1515_s16 = int_to_ptr.vmem [resolvable:$true] %s1514_s16 }
 0x220   :  { %v1464_v20 = vadd.f32 %v1433_v6, %v1432_v46  ;;  %v1437_v27 = vmul.f32 %v2035_v18, %v1298_v51  ;;  %v2039_v47 = vld [vmem:[#allocation7 + $0x48] sm:$0xff]  ;;  %v2040_v3 = vld [vmem:[#allocation7 + $0x50] sm:$0xff]  ;;  %v2041_v49 = vld [vmem:[#allocation7 + $0x58] sm:$0xff]  ;;  %s2162_s17 = scalar_lea.vmem %s1515_s16, 16  ;;  %s2166_s18 = scalar_lea.vmem %s1515_s16, 32 }
 0x221   :  { %v1300_v25 = vpop.f32.mrf.mxu0  ;;  %v2046_v0 = vld [vmem:[#allocation7 + $0x80] sm:$0xff]  ;;  %v2048_v40 = vld [vmem:[#allocation7 + $0x90] sm:$0xff]  ;;  %v2049_v58 = vld [vmem:[#allocation7 + $0x98] sm:$0xff]  ;;  %p2163_p11 = scmp.ne.s32.totalorder %s1515_s16, %s2162_s17  ;;  %p2167_p12 = scmp.lt.s32.totalorder %s1515_s16, %s1515_s16 }
 0x222   :  { %v1465_v26 = vadd.f32 %v1464_v20, %v1434_v63  ;;  %v2047_v63 = vld [vmem:[#allocation7 + $0x88] sm:$0xff]  ;;  %p2168_p13 = scmp.lt.s32.totalorder %s2166_s18, %s2162_s17 }
 0x223   :  { %v1303_v5 = vpop.f32.mrf.mxu0 }
 0x224   :  { %v1466_v41 = vadd.f32 %v1465_v26, %v1435_v39  ;;  %v1438_v36 = vmul.f32 %v2036_v15, %v1303_v5  ;;  %p2169_p0 = por %p2168_p13, %p2167_p12 }
 0x225   :  { %v1305_v32 = vpop.f32.mrf.mxu0 }
 0x226   :  { %v1467_v48 = vadd.f32 %v1466_v41, %v1436_v55  ;;  %v2042_v32 = vld [vmem:[#allocation7 + $0x60] sm:$0xff]  ;;  %p2170_p1 = pnand %p2169_p0, %p2163_p11 }
 0x227   :  { %v1308_v56 = vpop.f32.mrf.mxu0  ;;  %v2050_v41 = vld [vmem:[#allocation7 + $0xa0] sm:$0xff] }
 0x228   :  { %v1468_v19 = vadd.f32 %v1467_v48, %v1437_v27  ;;  %v1439_v30 = vmul.f32 %v2037_v60, %v1308_v56  ;;  %v2051_v48 = vld [vmem:[#allocation7 + $0xa8] sm:$0xff] }
 0x229   :  { %v1310_v11 = vpop.f32.mrf.mxu0 }
 0x22a   :  { %v1469_v44 = vadd.f32 %v1468_v19, %v1438_v36 }
 0x22b   :  { %v1313_v8 = vpop.f32.mrf.mxu0 }
 0x22c   :  { %v1440_v28 = vmul.f32 %v2038_v37, %v1313_v8  ;;  %v1470_v16 = vadd.f32 %v1469_v44, %v1439_v30  ;;  %v2053_v30 = vld [vmem:[#allocation7 + $0xb8] sm:$0xff] }
 0x22d   :  { %v1315_v7 = vpop.f32.mrf.mxu0 }
 0x22e   :  { %v1471_v1 = vadd.f32 %v1470_v16, %v1440_v28  ;;  %v2054_v28 = vld [vmem:[#allocation7 + $0xc0] sm:$0xff] }
 0x22f   :  { %v1318_v34 = vpop.f32.mrf.mxu0 }
 0x230   :  { %v1441_v4 = vmul.f32 %v2039_v47, %v1318_v34  ;;  %v2055_v47 = vld [vmem:[#allocation7 + $0xc8] sm:$0xff] }
 0x231   :  { %v1320_v33 = vpop.f32.mrf.mxu0 }
 0x232   :  { %v1472_v13 = vadd.f32 %v1471_v1, %v1441_v4  ;;  %v2043_v33 = vld [vmem:[#allocation7 + $0x68] sm:$0xff] }
 0x233   :  { %v1323_v38 = vpop.f32.mrf.mxu0 }
 0x234   :  { %v1442_v17 = vmul.f32 %v2040_v3, %v1323_v38  ;;  %v2056_v3 = vld [vmem:[#allocation7 + $0xd0] sm:$0xff] }
 0x235   :  { %v1325_v52 = vpop.f32.mrf.mxu0 }
 0x236   :  { %v1473_v5 = vadd.f32 %v1472_v13, %v1442_v17 }
 0x237   :  { %v1328_v53 = vpop.f32.mrf.mxu0 }
 0x238   :  { %v1443_v51 = vmul.f32 %v2041_v49, %v1328_v53  ;;  %v2057_v49 = vld [vmem:[#allocation7 + $0xd8] sm:$0xff] }
 0x239   :  { %v1330_v59 = vpop.f32.mrf.mxu0 }
 0x23a   :  { %v1474_v7 = vadd.f32 %v1473_v5, %v1443_v51 }
 0x23b   :  { %v1333_v9 = vpop.f32.mrf.mxu0 }
 0x23c   :  { %v1444_v56 = vmul.f32 %v2042_v32, %v1333_v9  ;;  %v2058_v32 = vld [vmem:[#allocation7 + $0xe0] sm:$0xff] }
 0x23d   :  { %v1335_v22 = vpop.f32.mrf.mxu0 }
 0x23e   :  { %v1475_v59 = vadd.f32 %v1474_v7, %v1444_v56  ;;  %v2044_v22 = vld [vmem:[#allocation7 + $0x70] sm:$0xff] }
 0x23f   :  { %v1338_v12 = vpop.f32.mrf.mxu0 }
 0x240   :  { %v1445_v8 = vmul.f32 %v2043_v33, %v1338_v12  ;;  %v2059_v33 = vld [vmem:[#allocation7 + $0xe8] sm:$0xff] }
 0x241   :  { %v1340_v14 = vpop.f32.mrf.mxu0 }
 0x243   :  { %v1343_v31 = vpop.f32.mrf.mxu0 }
 0x244   :  { %v1446_v34 = vmul.f32 %v2044_v22, %v1343_v31  ;;  %v2060_v22 = vld [vmem:[#allocation7 + $0xf0] sm:$0xff] }
 0x245   :  { %v1345_v57 = vpop.f32.mrf.mxu0 }
 0x246   :  { %v1476_v57 = vadd.f32 %v1475_v59, %v1445_v8 }
 0x247   :  { %v1348_v2 = vpop.f32.mrf.mxu0 }
 0x248   :  { %v1477_v6 = vadd.f32 %v1476_v57, %v1446_v34 }
 0x249   :  { %v1350_v43 = vpop.f32.mrf.mxu0 }
 0x24a   :  { %v2045_v43 = vld [vmem:[#allocation7 + $0x78] sm:$0xff] }
 0x24b   :  { %v1353_v21 = vpop.f32.mrf.mxu0  ;;  %v1447_v38 = vmul.f32 %v2045_v43, %v1348_v2 }
 0x24c   :  { %v1448_v53 = vmul.f32 %v2046_v0, %v1353_v21 }
 0x24d   :  { %v1355_v62 = vpop.f32.mrf.mxu0  ;;  %v1478_v42 = vadd.f32 %v1477_v6, %v1447_v38 }
 0x24f   :  { %v1358_v10 = vpop.f32.mrf.mxu0  ;;  %v1479_v20 = vadd.f32 %v1478_v42, %v1448_v53 }
 0x250   :  { %v1449_v9 = vmul.f32 %v2047_v63, %v1358_v10 }
 0x251   :  { %v1360_v45 = vpop.f32.mrf.mxu0 }
 0x252   :  { %v1480_v26 = vadd.f32 %v1479_v20, %v1449_v9  ;;  %v1503_v20 = vld [vmem:[#allocation10] sm:$0x1] }
 0x253   :  { %v1363_v29 = vpop.f32.mrf.mxu0 }
 0x254   :  { %v1450_v12 = vmul.f32 %v2048_v40, %v1363_v29 }
 0x255   :  { %v1365_v24 = vpop.f32.mrf.mxu0 }
 0x256   :  { %v1481_v45 = vadd.f32 %v1480_v26, %v1450_v12  ;;  %v2052_v24 = vld [vmem:[#allocation7 + $0xb0] sm:$0xff] }
 0x257   :  { %v1368_v54 = vpop.f32.mrf.mxu0 }
 0x258   :  { %v1451_v31 = vmul.f32 %v2049_v58, %v1368_v54 }
 0x259   :  { %v1370_v61 = vpop.f32.mrf.mxu0 }
 0x25a   :  { %v1482_v27 = vadd.f32 %v1481_v45, %v1451_v31 }
 0x25b   :  { %v1373_v50 = vpop.f32.mrf.mxu0 }
 0x25c   :  { %v1452_v2 = vmul.f32 %v2050_v41, %v1373_v50 }
 0x25d   :  { %v1375_v35 = vpop.f32.mrf.mxu0 }
 0x25e   :  { %v1483_v36 = vadd.f32 %v1482_v27, %v1452_v2 }
 0x25f   :  { %v1378_v25 = vpop.f32.mrf.mxu0 }
 0x260   :  { %v1453_v21 = vmul.f32 %v2051_v48, %v1378_v25 }
 0x261   :  { %v1380_v11 = vpop.f32.mrf.mxu0 }
 0x262   :  { %v1484_v60 = vadd.f32 %v1483_v36, %v1453_v21 }
 0x263   :  { %v1383_v52 = vpop.f32.mrf.mxu0 }
 0x264   :  { %v1454_v10 = vmul.f32 %v2052_v24, %v1383_v52 }
 0x265   :  { %v1385_v14 = vpop.f32.mrf.mxu0 }
 0x266   :  { %v1485_v37 = vadd.f32 %v1484_v60, %v1454_v10 }
 0x267   :  { %v1388_v23 = vpop.f32.mrf.mxu0 }
 0x268   :  { %v1455_v29 = vmul.f32 %v2053_v30, %v1388_v23  ;;  %v2061_v23 = vld [vmem:[#allocation7 + $0xf8] sm:$0xff] }
 0x269   :  { %v1390_v46 = vpop.f32.mrf.mxu0 }
 0x26a   :  { %v1486_v16 = vadd.f32 %v1485_v37, %v1455_v29 }
 0x26b   :  { %v1393_v62 = vpop.f32.mrf.mxu0 }
 0x26c   :  { %v1456_v54 = vmul.f32 %v2054_v28, %v1393_v62 }
 0x26d   :  { %v1395_v39 = vpop.f32.mrf.mxu0 }
 0x26e   :  { %v1487_v1 = vadd.f32 %v1486_v16, %v1456_v54 }
 0x26f   :  { %v1398_v55 = vpop.f32.mrf.mxu0 }
 0x270   :  { %v1457_v4 = vmul.f32 %v2055_v47, %v1398_v55 }
 0x271   :  { %v1400_v18 = vpop.f32.mrf.mxu0 }
 0x272   :  { %v1488_v13 = vadd.f32 %v1487_v1, %v1457_v4 }
 0x273   :  { %v1403_v15 = vpop.f32.mrf.mxu0 }
 0x274   :  { %v1458_v17 = vmul.f32 %v2056_v3, %v1403_v15 }
 0x275   :  { %v1405_v19 = vpop.f32.mrf.mxu0 }
 0x276   :  { %v1489_v5 = vadd.f32 %v1488_v13, %v1458_v17 }
 0x277   :  { %v1408_v44 = vpop.f32.mrf.mxu0 }
 0x278   :  { %v1459_v51 = vmul.f32 %v2057_v49, %v1408_v44 }
 0x279   :  { %v1410_v61 = vpop.f32.mrf.mxu0 }
 0x27a   :  { %v1490_v7 = vadd.f32 %v1489_v5, %v1459_v51 }
 0x27b   :  { %v1413_v50 = vpop.f32.mrf.mxu1 }
 0x27c   :  { %v1460_v56 = vmul.f32 %v2058_v32, %v1413_v50 }
 0x27d   :  { %v1415_v35 = vpop.f32.mrf.mxu1 }
 0x27e   :  { %v1491_v59 = vadd.f32 %v1490_v7, %v1460_v56 }
 0x27f   :  { %v1418_v25 = vpop.f32.mrf.mxu1 }
 0x280   :  { %v1461_v8 = vmul.f32 %v2059_v33, %v1418_v25 }
 0x281   :  { %v1420_v11 = vpop.f32.mrf.mxu1 }
 0x282   :  { %v1492_v57 = vadd.f32 %v1491_v59, %v1461_v8 }
 0x283   :  { %v1423_v52 = vpop.f32.mrf.mxu1 }
 0x284   :  { %v1462_v34 = vmul.f32 %v2060_v22, %v1423_v52 }
 0x285   :  { %v1425_v14 = vpop.f32.mrf.mxu1 }
 0x286   :  { %v1493_v38 = vadd.f32 %v1492_v57, %v1462_v34 }
 0x287   :  { %v1428_v43 = vpop.f32.mrf.mxu1 }
 0x288   :  { %v1463_v6 = vmul.f32 %v2061_v23, %v1428_v43 }
 0x289   :  { %v1430_v0 = vpop.f32.mrf.mxu1 }
 0x28a   :  { %v1494_v53 = vadd.f32 %v1493_v38, %v1463_v6 }
 0x28c   :  { %v1495_v46 = vrot.slane %v1494_v53, 4 }
 0x28e   :  { %v1496_v42 = vadd.f32 %v1495_v46, %v1494_v53 }
 0x290   :  { %v1497_v63 = vrot.slane %v1496_v42, 2 }
 0x292   :  { %v1498_v9 = vadd.f32 %v1497_v63, %v1496_v42 }
 0x294   :  { %v1499_v62 = vrot.slane %v1498_v9, 1 }
 0x296   :  { %v1500_v40 = vadd.f32 %v1499_v62, %v1498_v9 }
 0x298   :  { %v1506_v12 = vadd.f32 %v1503_v20, %v1500_v40 }
 0x29a   :  { %1507 = vst [vmem:[#allocation10] sm:$0x1] %v1506_v12 }
 0x29b   :  { %2173 = shalt.err (!%p2170_p1)
}
 0x29c   :  { %1517 = dma.vmem_to_hbm [thread:$0]  %s1515_s16, 16, %s3370_s4, [#allocation4]  }
 0x29d   :  { %2188 = dma.done.wait [#allocation4], 16  }
 0x29e   :  { %2189 = vsyncadd [#allocation4], 4294967280 }
 0x29f   :  { %2190 = dma.done.wait [#allocation12], 2048  }
 0x2a0   :  { %2191 = vsyncadd [#allocation12], 4294965248 }
 0x2a1   :  { %1536 = vsyncpa [#allocation3], 1 }
 0x2a2   :  { %1537 = vsyncpa [#allocation6], 1 }
 0x2a3   :  { %1538 = vsyncpa [#allocation9], 1 }
 0x2a4   :  { %1539 = vsyncpa [#allocation4], 1 }
 0x2a5   :  { %1540 = vsyncpa [#allocation12], 1 }

</bundles_post_ra>
